<compile_context>
chip_gen: v7x
topology: tpu7x:2x2x1
jax: 0.10.0
libtpu: 0.0.40
codegen_flags: <defaults>
</compile_context>

<pallas_src>
import jax
import jax.numpy as jnp
import numpy as np
from jax import lax
from jax.experimental import pallas as pl
from jax.experimental.pallas import tpu as pltpu

EPS = 1e-5
K = 4  # ConvTranspose2d kernel size


def _combined_subpixel_weight(w_t, cout_p):
    """(Cin, Cout, 4, 4) ConvTranspose2d weight -> (9, Cin, 4*cout_p) bf16.

    Offset block dh*3+dw (dh, dw in 0..2) holds, for each output phase
    (r, c) = (oh % 2, ow % 2), the original tap
    (kh, kw) = (3 + r - 2*dh, 3 + c - 2*dw) when dh in {r, r+1} and
    dw in {c, c+1}; zero otherwise.  Output channels are zero-padded to
    cout_p so kernel stores are lane-dense (4*cout_p is a multiple of 128).
    """
    cin, cout = w_t.shape[0], w_t.shape[1]
    w = np.asarray(w_t, np.float32)
    wc = np.zeros((3, 3, cin, 2, 2, cout_p), np.float32)
    for r in range(2):
        for c in range(2):
            for dh in range(r, r + 2):
                for dw in range(c, c + 2):
                    kh = 3 + r - 2 * dh
                    kw = 3 + c - 2 * dw
                    wc[dh, dw, :, r, c, :cout] = w[:, :, kh, kw]
    return jnp.asarray(wc.reshape(9, cin, 4 * cout_p), jnp.bfloat16)


def up_block(x_nchw, w_t, gamma, beta):
    """UpBlock forward.

    x_nchw: (N, Cin, H, W) float32 (PyTorch NCHW)
    w_t:    (Cin, Cout, 4, 4) ConvTranspose2d weight (PyTorch layout)
    gamma, beta: (Cout,) BatchNorm affine parameters
    returns (N, Cout, 2H, 2W) in NCHW.
    """
    N, Cin, H, W = x_nchw.shape
    Cout = w_t.shape[1]
    Cout_p = ((Cout + 31) // 32) * 32      # 4*Cout_p is a multiple of 128
    C4 = 4 * Cout_p
    Wp = W + 2                             # padded width (2 garbage cols/row)
    Mt = H * Wp                            # rows per image in the conv tile
    Rp = (H + 3) * Wp                      # flattened padded rows per image

    # ---- layout glue (plain JAX): pad, flatten spatial, cast to bf16 ----
    x = jnp.transpose(x_nchw, (0, 2, 3, 1)).astype(jnp.float32)      # NHWC
    xp = jnp.pad(x, ((0, 0), (1, 2), (1, 1), (0, 0)))                # (N,H+3,W+2,Cin)
    xflat = xp.reshape(N, Rp, Cin).astype(jnp.bfloat16)

    wc = _combined_subpixel_weight(w_t, Cout_p)                      # (9,Cin,C4)

    # rows whose w-coordinate is a garbage column (w >= W) are masked out of
    # the BN statistics (and dropped later by the pixel shuffle).
    mask = jnp.asarray(
        (np.arange(Mt) % Wp < W).astype(np.float32).reshape(Mt, 1))

    # ---------------- pass 1: transposed conv + BN statistics --------------
    def conv_stats_kernel(x_ref, w_ref, m_ref, conv_ref, stats_ref):
        @pl.when(pl.program_id(0) == 0)
        def _init():
            stats_ref[...] = jnp.zeros_like(stats_ref)

        xin = x_ref[0]                                   # (Rp, Cin) bf16
        acc = jnp.zeros((Mt, C4), jnp.float32)
        for dh in range(3):                              # unrolled: 9 MXU dots
            for dw in range(3):
                s = dh * Wp + dw
                xs = xin[s:s + Mt, :]                    # (Mt, Cin) bf16
                acc += jnp.dot(xs, w_ref[dh * 3 + dw],
                               preferred_element_type=jnp.float32)

        conv_ref[...] = acc[None]                        # (1, Mt, C4) f32

        m = m_ref[...]                                   # (Mt, 1) validity mask
        am = acc * m
        s1 = jnp.sum(am, axis=0, keepdims=True)          # (1, C4)
        s2 = jnp.sum(am * acc, axis=0, keepdims=True)    # (1, C4)
        stats_ref[...] += jnp.concatenate([s1, s2], axis=0)

    conv, stats = pl.pallas_call(
        conv_stats_kernel,
        grid=(N,),
        in_specs=[
            pl.BlockSpec((1, Rp, Cin), lambda n: (n, 0, 0)),
            pl.BlockSpec((9, Cin, C4), lambda n: (0, 0, 0)),   # resident weight
            pl.BlockSpec((Mt, 1), lambda n: (0, 0)),           # resident mask
        ],
        out_specs=(
            pl.BlockSpec((1, Mt, C4), lambda n: (n, 0, 0)),
            pl.BlockSpec((2, C4), lambda n: (0, 0)),           # resident accum
        ),
        out_shape=(
            jax.ShapeDtypeStruct((N, Mt, C4), jnp.float32),
            jax.ShapeDtypeStruct((2, C4), jnp.float32),
        ),
        compiler_params=pltpu.CompilerParams(
            dimension_semantics=("arbitrary",),
            vmem_limit_bytes=32 * 1024 * 1024),
    )(xflat, wc, mask)

    # ---- BN finalize (O(Cout) work, plain JAX): fold phases + affine ----
    cnt = 4.0 * N * H * W
    s1 = stats[0].reshape(4, Cout_p).sum(axis=0)
    s2 = stats[1].reshape(4, Cout_p).sum(axis=0)
    mean = s1 / cnt
    var = s2 / cnt - mean * mean                         # biased (training BN)
    inv_std = lax.rsqrt(var + EPS)
    gamma_p = jnp.zeros((Cout_p,), jnp.float32).at[:Cout].set(
        gamma.astype(jnp.float32))
    beta_p = jnp.zeros((Cout_p,), jnp.float32).at[:Cout].set(
        beta.astype(jnp.float32))
    scale = gamma_p * inv_std
    shift = beta_p - mean * scale
    scale4 = jnp.tile(scale, 4).reshape(1, 1, C4)
    shift4 = jnp.tile(shift, 4).reshape(1, 1, C4)

    # ------------- pass 2: fused BN affine + ReLU, written in place --------
    def bn_relu_kernel(conv_ref, sc_ref, sh_ref, out_ref):
        out_ref[...] = jnp.maximum(
            conv_ref[...] * sc_ref[...] + sh_ref[...], 0.0)

    y = pl.pallas_call(
        bn_relu_kernel,
        grid=(N,),
        in_specs=[
            pl.BlockSpec((1, Mt, C4), lambda n: (n, 0, 0)),
            pl.BlockSpec((1, 1, C4), lambda n: (0, 0, 0)),
            pl.BlockSpec((1, 1, C4), lambda n: (0, 0, 0)),
        ],
        out_specs=pl.BlockSpec((1, Mt, C4), lambda n: (n, 0, 0)),
        out_shape=jax.ShapeDtypeStruct((N, Mt, C4), jnp.float32),
        input_output_aliases={0: 0},
        compiler_params=pltpu.CompilerParams(
            dimension_semantics=("parallel",),
            vmem_limit_bytes=32 * 1024 * 1024),
    )(conv, scale4, shift4)

    # ---- pixel shuffle + drop padding/garbage (layout glue) ----
    o = y.reshape(N, H, Wp, 2, 2, Cout_p)[:, :, :W, :, :, :Cout]
    o = jnp.transpose(o, (0, 5, 1, 3, 2, 4))             # (N, Cout, H, 2, W, 2)
    return o.reshape(N, Cout, 2 * H, 2 * W)


def reference(x_nchw, w_t, gamma, beta):
    """Pure-JAX reference (XLA conv) of ConvTranspose2d + BN(train) + ReLU."""
    w_oihw = jnp.transpose(w_t[:, :, ::-1, ::-1], (1, 0, 2, 3))
    y = lax.conv_general_dilated(
        x_nchw, w_oihw, window_strides=(1, 1), padding=((2, 2), (2, 2)),
        lhs_dilation=(2, 2), dimension_numbers=('NCHW', 'OIHW', 'NCHW'))
    mean = jnp.mean(y, axis=(0, 2, 3), keepdims=True)
    var = jnp.mean((y - mean) ** 2, axis=(0, 2, 3), keepdims=True)
    y = (y - mean) * lax.rsqrt(var + EPS)
    y = y * gamma.reshape(1, -1, 1, 1) + beta.reshape(1, -1, 1, 1)
    return jnp.maximum(y, 0.0)


if __name__ == "__main__":
    key = jax.random.PRNGKey(0)
    k1, k2, k3, k4 = jax.random.split(key, 4)

    N, Cin, Cout, H, W = 2, 4, 8, 16, 16
    x = jax.random.normal(k1, (N, Cin, H, W), jnp.float32)
    # ConvTranspose2d weight shape: (in_channels, out_channels, 4, 4), bias=False
    w_t = 0.1 * jax.random.normal(k2, (Cin, Cout, K, K), jnp.float32)
    # BatchNorm2d affine parameters (deterministic, non-trivial)
    gamma = 1.0 + 0.1 * jax.random.normal(k3, (Cout,), jnp.float32)
    beta = 0.1 * jax.random.normal(k4, (Cout,), jnp.float32)

    out = up_block(x, w_t, gamma, beta)
    jax.block_until_ready(out)

    assert out.shape == (N, Cout, 2 * H, 2 * W), out.shape
    ref = reference(x, w_t, gamma, beta)
    # bf16 MXU operands -> looser tolerance than the pure-f32 version.
    np.testing.assert_allclose(np.asarray(out), np.asarray(ref),
                               rtol=3e-2, atol=3e-2)
    print("KERNEL_OK")
</pallas_src>

<mosaic_0001>
module attributes {stable_mosaic.version = 11 : i64} {
  func.func @conv_stats_kernel(%arg0: i32, %arg1: memref<1x342x4xbf16, #tpu.memory_space<vmem>>, %arg2: memref<9x4x128xbf16, #tpu.memory_space<vmem>>, %arg3: memref<288x1xf32, #tpu.memory_space<vmem>>, %arg4: memref<1x288x128xf32, #tpu.memory_space<vmem>>, %arg5: memref<2x128xf32, #tpu.memory_space<vmem>>) attributes {dimension_semantics = [#tpu.dimension_semantics<arbitrary>], iteration_bounds = array<i64: 2>, scalar_prefetch = 0 : i64, scratch_operands = 0 : i64, tpu.core_type = #tpu.core_type<tc>, window_params = [{transform_indices = @transform_0, window_bounds = array<i64: 1, 342, 4>}, {pipeline_mode = #tpu.pipeline_mode<synchronous>, transform_indices = @transform_1, window_bounds = array<i64: 9, 4, 128>}, {pipeline_mode = #tpu.pipeline_mode<synchronous>, transform_indices = @transform_2, window_bounds = array<i64: 288, 1>}, {transform_indices = @transform_3, window_bounds = array<i64: 1, 288, 128>}, {pipeline_mode = #tpu.pipeline_mode<synchronous>, transform_indices = @transform_4, window_bounds = array<i64: 2, 128>}]} {
    %c0_i32 = arith.constant 0 : i32
    %0 = arith.cmpi eq, %arg0, %c0_i32 : i32
    %1 = arith.extui %0 : i1 to i32
    %c0_i32_0 = arith.constant 0 : i32
    %2 = arith.cmpi ne, %1, %c0_i32_0 : i32
    scf.if %2 {
      %cst_42 = arith.constant 0.000000e+00 : f32
      %65 = vector.broadcast %cst_42 : f32 to vector<2x128xf32>
      %c0_43 = arith.constant 0 : index
      %c0_44 = arith.constant 0 : index
      %66 = vector.load %arg5[%c0_43, %c0_44] : memref<2x128xf32, #tpu.memory_space<vmem>>, vector<2x128xf32>
      tpu.vector_store %arg5[%c0_43, %c0_44], %65 {strides = array<i32>} : memref<2x128xf32, #tpu.memory_space<vmem>>, vector<2x128xf32>,
    } else {
    }
    %c0 = arith.constant 0 : index
    %c0_1 = arith.constant 0 : index
    %c0_2 = arith.constant 0 : index
    %3 = vector.load %arg1[%c0, %c0_1, %c0_2] : memref<1x342x4xbf16, #tpu.memory_space<vmem>>, vector<1x342x4xbf16>
    %4 = vector.shape_cast %3 : vector<1x342x4xbf16> to vector<342x4xbf16>
    %cst = arith.constant 0.000000e+00 : f32
    %5 = vector.broadcast %cst : f32 to vector<288x128xf32>
    %6 = vector.extract_strided_slice %4 {offsets = [0, 0], sizes = [288, 4], strides = [1, 1]} : vector<342x4xbf16> to vector<288x4xbf16>
    %c0_3 = arith.constant 0 : index
    %c0_4 = arith.constant 0 : index
    %c0_5 = arith.constant 0 : index
    %7 = vector.load %arg2[%c0_3, %c0_4, %c0_5] : memref<9x4x128xbf16, #tpu.memory_space<vmem>>, vector<1x4x128xbf16>
    %8 = vector.shape_cast %7 : vector<1x4x128xbf16> to vector<4x128xbf16>
    %cst_6 = arith.constant dense<0.000000e+00> : vector<288x128xf32>
    %9 = tpu.matmul %6, %8, %cst_6 {dimension_numbers = #tpu.dot_dimension_numbers<[1], [0], [0], [1], [0, 0, 1, 1], [], []>} : vector<288x4xbf16>, vector<4x128xbf16>, vector<288x128xf32> -> vector<288x128xf32>
    %10 = arith.addf %5, %9 : vector<288x128xf32>
    %11 = vector.extract_strided_slice %4 {offsets = [1, 0], sizes = [288, 4], strides = [1, 1]} : vector<342x4xbf16> to vector<288x4xbf16>
    %c1 = arith.constant 1 : index
    %c0_7 = arith.constant 0 : index
    %c0_8 = arith.constant 0 : index
    %12 = vector.load %arg2[%c1, %c0_7, %c0_8] : memref<9x4x128xbf16, #tpu.memory_space<vmem>>, vector<1x4x128xbf16>
    %13 = vector.shape_cast %12 : vector<1x4x128xbf16> to vector<4x128xbf16>
    %cst_9 = arith.constant dense<0.000000e+00> : vector<288x128xf32>
    %14 = tpu.matmul %11, %13, %cst_9 {dimension_numbers = #tpu.dot_dimension_numbers<[1], [0], [0], [1], [0, 0, 1, 1], [], []>} : vector<288x4xbf16>, vector<4x128xbf16>, vector<288x128xf32> -> vector<288x128xf32>
    %15 = arith.addf %10, %14 : vector<288x128xf32>
    %16 = vector.extract_strided_slice %4 {offsets = [2, 0], sizes = [288, 4], strides = [1, 1]} : vector<342x4xbf16> to vector<288x4xbf16>
    %c2 = arith.constant 2 : index
    %c0_10 = arith.constant 0 : index
    %c0_11 = arith.constant 0 : index
    %17 = vector.load %arg2[%c2, %c0_10, %c0_11] : memref<9x4x128xbf16, #tpu.memory_space<vmem>>, vector<1x4x128xbf16>
    %18 = vector.shape_cast %17 : vector<1x4x128xbf16> to vector<4x128xbf16>
    %cst_12 = arith.constant dense<0.000000e+00> : vector<288x128xf32>
    %19 = tpu.matmul %16, %18, %cst_12 {dimension_numbers = #tpu.dot_dimension_numbers<[1], [0], [0], [1], [0, 0, 1, 1], [], []>} : vector<288x4xbf16>, vector<4x128xbf16>, vector<288x128xf32> -> vector<288x128xf32>
    %20 = arith.addf %15, %19 : vector<288x128xf32>
    %21 = vector.extract_strided_slice %4 {offsets = [18, 0], sizes = [288, 4], strides = [1, 1]} : vector<342x4xbf16> to vector<288x4xbf16>
    %c3 = arith.constant 3 : index
    %c0_13 = arith.constant 0 : index
    %c0_14 = arith.constant 0 : index
    %22 = vector.load %arg2[%c3, %c0_13, %c0_14] : memref<9x4x128xbf16, #tpu.memory_space<vmem>>, vector<1x4x128xbf16>
    %23 = vector.shape_cast %22 : vector<1x4x128xbf16> to vector<4x128xbf16>
    %cst_15 = arith.constant dense<0.000000e+00> : vector<288x128xf32>
    %24 = tpu.matmul %21, %23, %cst_15 {dimension_numbers = #tpu.dot_dimension_numbers<[1], [0], [0], [1], [0, 0, 1, 1], [], []>} : vector<288x4xbf16>, vector<4x128xbf16>, vector<288x128xf32> -> vector<288x128xf32>
    %25 = arith.addf %20, %24 : vector<288x128xf32>
    %26 = vector.extract_strided_slice %4 {offsets = [19, 0], sizes = [288, 4], strides = [1, 1]} : vector<342x4xbf16> to vector<288x4xbf16>
    %c4 = arith.constant 4 : index
    %c0_16 = arith.constant 0 : index
    %c0_17 = arith.constant 0 : index
    %27 = vector.load %arg2[%c4, %c0_16, %c0_17] : memref<9x4x128xbf16, #tpu.memory_space<vmem>>, vector<1x4x128xbf16>
    %28 = vector.shape_cast %27 : vector<1x4x128xbf16> to vector<4x128xbf16>
    %cst_18 = arith.constant dense<0.000000e+00> : vector<288x128xf32>
    %29 = tpu.matmul %26, %28, %cst_18 {dimension_numbers = #tpu.dot_dimension_numbers<[1], [0], [0], [1], [0, 0, 1, 1], [], []>} : vector<288x4xbf16>, vector<4x128xbf16>, vector<288x128xf32> -> vector<288x128xf32>
    %30 = arith.addf %25, %29 : vector<288x128xf32>
    %31 = vector.extract_strided_slice %4 {offsets = [20, 0], sizes = [288, 4], strides = [1, 1]} : vector<342x4xbf16> to vector<288x4xbf16>
    %c5 = arith.constant 5 : index
    %c0_19 = arith.constant 0 : index
    %c0_20 = arith.constant 0 : index
    %32 = vector.load %arg2[%c5, %c0_19, %c0_20] : memref<9x4x128xbf16, #tpu.memory_space<vmem>>, vector<1x4x128xbf16>
    %33 = vector.shape_cast %32 : vector<1x4x128xbf16> to vector<4x128xbf16>
    %cst_21 = arith.constant dense<0.000000e+00> : vector<288x128xf32>
    %34 = tpu.matmul %31, %33, %cst_21 {dimension_numbers = #tpu.dot_dimension_numbers<[1], [0], [0], [1], [0, 0, 1, 1], [], []>} : vector<288x4xbf16>, vector<4x128xbf16>, vector<288x128xf32> -> vector<288x128xf32>
    %35 = arith.addf %30, %34 : vector<288x128xf32>
    %36 = vector.extract_strided_slice %4 {offsets = [36, 0], sizes = [288, 4], strides = [1, 1]} : vector<342x4xbf16> to vector<288x4xbf16>
    %c6 = arith.constant 6 : index
    %c0_22 = arith.constant 0 : index
    %c0_23 = arith.constant 0 : index
    %37 = vector.load %arg2[%c6, %c0_22, %c0_23] : memref<9x4x128xbf16, #tpu.memory_space<vmem>>, vector<1x4x128xbf16>
    %38 = vector.shape_cast %37 : vector<1x4x128xbf16> to vector<4x128xbf16>
    %cst_24 = arith.constant dense<0.000000e+00> : vector<288x128xf32>
    %39 = tpu.matmul %36, %38, %cst_24 {dimension_numbers = #tpu.dot_dimension_numbers<[1], [0], [0], [1], [0, 0, 1, 1], [], []>} : vector<288x4xbf16>, vector<4x128xbf16>, vector<288x128xf32> -> vector<288x128xf32>
    %40 = arith.addf %35, %39 : vector<288x128xf32>
    %41 = vector.extract_strided_slice %4 {offsets = [37, 0], sizes = [288, 4], strides = [1, 1]} : vector<342x4xbf16> to vector<288x4xbf16>
    %c7 = arith.constant 7 : index
    %c0_25 = arith.constant 0 : index
    %c0_26 = arith.constant 0 : index
    %42 = vector.load %arg2[%c7, %c0_25, %c0_26] : memref<9x4x128xbf16, #tpu.memory_space<vmem>>, vector<1x4x128xbf16>
    %43 = vector.shape_cast %42 : vector<1x4x128xbf16> to vector<4x128xbf16>
    %cst_27 = arith.constant dense<0.000000e+00> : vector<288x128xf32>
    %44 = tpu.matmul %41, %43, %cst_27 {dimension_numbers = #tpu.dot_dimension_numbers<[1], [0], [0], [1], [0, 0, 1, 1], [], []>} : vector<288x4xbf16>, vector<4x128xbf16>, vector<288x128xf32> -> vector<288x128xf32>
    %45 = arith.addf %40, %44 : vector<288x128xf32>
    %46 = vector.extract_strided_slice %4 {offsets = [38, 0], sizes = [288, 4], strides = [1, 1]} : vector<342x4xbf16> to vector<288x4xbf16>
    %c8 = arith.constant 8 : index
    %c0_28 = arith.constant 0 : index
    %c0_29 = arith.constant 0 : index
    %47 = vector.load %arg2[%c8, %c0_28, %c0_29] : memref<9x4x128xbf16, #tpu.memory_space<vmem>>, vector<1x4x128xbf16>
    %48 = vector.shape_cast %47 : vector<1x4x128xbf16> to vector<4x128xbf16>
    %cst_30 = arith.constant dense<0.000000e+00> : vector<288x128xf32>
    %49 = tpu.matmul %46, %48, %cst_30 {dimension_numbers = #tpu.dot_dimension_numbers<[1], [0], [0], [1], [0, 0, 1, 1], [], []>} : vector<288x4xbf16>, vector<4x128xbf16>, vector<288x128xf32> -> vector<288x128xf32>
    %50 = arith.addf %45, %49 : vector<288x128xf32>
    %51 = vector.shape_cast %50 : vector<288x128xf32> to vector<1x288x128xf32>
    %c0_31 = arith.constant 0 : index
    %c0_32 = arith.constant 0 : index
    %c0_33 = arith.constant 0 : index
    %52 = vector.load %arg4[%c0_31, %c0_32, %c0_33] : memref<1x288x128xf32, #tpu.memory_space<vmem>>, vector<1x288x128xf32>
    tpu.vector_store %arg4[%c0_31, %c0_32, %c0_33], %51 {strides = array<i32>} : memref<1x288x128xf32, #tpu.memory_space<vmem>>, vector<1x288x128xf32>,
    %c0_34 = arith.constant 0 : index
    %c0_35 = arith.constant 0 : index
    %53 = vector.load %arg3[%c0_34, %c0_35] : memref<288x1xf32, #tpu.memory_space<vmem>>, vector<288x1xf32>
    %54 = vector.broadcast %53 : vector<288x1xf32> to vector<288x128xf32>
    %55 = arith.mulf %50, %54 : vector<288x128xf32>
    %cst_36 = arith.constant dense<0.000000e+00> : vector<128xf32>
    %56 = vector.multi_reduction <add>, %55, %cst_36 [0] : vector<288x128xf32> to vector<128xf32>
    %57 = vector.shape_cast %56 : vector<128xf32> to vector<1x128xf32>
    %58 = arith.mulf %55, %50 : vector<288x128xf32>
    %cst_37 = arith.constant dense<0.000000e+00> : vector<128xf32>
    %59 = vector.multi_reduction <add>, %58, %cst_37 [0] : vector<288x128xf32> to vector<128xf32>
    %60 = vector.shape_cast %59 : vector<128xf32> to vector<1x128xf32>
    %c0_38 = arith.constant 0 : index
    %c0_39 = arith.constant 0 : index
    %61 = vector.load %arg5[%c0_38, %c0_39] : memref<2x128xf32, #tpu.memory_space<vmem>>, vector<2x128xf32>
    %62 = tpu.concatenate %57, %60 in 0 : vector<1x128xf32>, vector<1x128xf32> -> vector<2x128xf32>
    %63 = arith.addf %61, %62 : vector<2x128xf32>
    %c0_40 = arith.constant 0 : index
    %c0_41 = arith.constant 0 : index
    %64 = vector.load %arg5[%c0_40, %c0_41] : memref<2x128xf32, #tpu.memory_space<vmem>>, vector<2x128xf32>
    tpu.vector_store %arg5[%c0_40, %c0_41], %63 {strides = array<i32>} : memref<2x128xf32, #tpu.memory_space<vmem>>, vector<2x128xf32>,
    return
  }
  func.func @transform_0(%arg0: i32) -> (i32, i32, i32) {
    %c0_i32 = arith.constant 0 : i32
    %c0_i32_0 = arith.constant 0 : i32
    %c0_i32_1 = arith.constant 0 : i32
    return %arg0, %c0_i32, %c0_i32_0 : i32, i32, i32
  }
  func.func @transform_1(%arg0: i32) -> (i32, i32, i32) {
    %c0_i32 = arith.constant 0 : i32
    %c0_i32_0 = arith.constant 0 : i32
    %c0_i32_1 = arith.constant 0 : i32
    %c0_i32_2 = arith.constant 0 : i32
    return %c0_i32, %c0_i32_0, %c0_i32_1 : i32, i32, i32
  }
  func.func @transform_2(%arg0: i32) -> (i32, i32) {
    %c0_i32 = arith.constant 0 : i32
    %c0_i32_0 = arith.constant 0 : i32
    %c0_i32_1 = arith.constant 0 : i32
    return %c0_i32, %c0_i32_0 : i32, i32
  }
  func.func @transform_3(%arg0: i32) -> (i32, i32, i32) {
    %c0_i32 = arith.constant 0 : i32
    %c0_i32_0 = arith.constant 0 : i32
    %c0_i32_1 = arith.constant 0 : i32
    return %arg0, %c0_i32, %c0_i32_0 : i32, i32, i32
  }
  func.func @transform_4(%arg0: i32) -> (i32, i32) {
    %c0_i32 = arith.constant 0 : i32
    %c0_i32_0 = arith.constant 0 : i32
    %c0_i32_1 = arith.constant 0 : i32
    return %c0_i32, %c0_i32_0 : i32, i32
  }
}

</mosaic_0001>

<bundles_post_ra>
// kernel: tpu_custom_call.1
= control target key start
LH: loop header
LB: loop body
LE: loop exit
PB: predicated region body
PF: predicated region fallthrough
CT: control target
= control target key end

     0   :  { %10 = vsyncpa [#allocation3], 0  ;;  %s6048_s0 = inlined_call_operand.vmem [shape: bf16[2,342,4], index: 0, kind: input, shape index: {}]   ;;  %s6049_s1 = inlined_call_operand.vmem [shape: bf16[9,4,128], index: 1, kind: input, shape index: {}]   ;;  %s6050_s2 = inlined_call_operand.vmem [shape: f32[288,1], index: 2, kind: input, shape index: {}]   ;;  %s6051_s3 = inlined_call_operand.hbm [shape: f32[2,288,128], index: 3, kind: output, shape index: {0}]   ;;  %s6052_s4 = inlined_call_operand.hbm [shape: f32[2,128], index: 4, kind: output, shape index: {1}]  }
   0x1   :  { %12 = vsyncpa [#allocation3 + $0x1], 0 }
   0x2   :  { %13 = vsyncpa [#allocation5], 0  ;;  %s4791_s15 = smov 0   ;;  %s4793_s16 = smov 0  }
   0x3   :  { %s4795_s17 = smov 0   ;;  %s4797_s18 = smov 0  }
   0x4 LB: > { %s4812_s19 = sadd.s32 4294967295, %s4758_s18   ;;  %s3562_s20 = sadd.s32 4294967294, %s4758_s18   ;;  %s4758_s18 = sphi %s4797_s18, %s6120_s18   ;;  %s4754_s17 = sphi %s4795_s17, %s6119_s17   ;;  %s4750_s16 = sphi %s4793_s16, %s6118_s16   ;;  %s4746_s15 = sphi %s4791_s15, %s6117_s15  }
   0x5   : > { %s4816_s21 = sadd.s32 1, %s4758_s18   ;;  %s94_s22 = sadd.s32 1, %s4754_s17 }
   0x6   : > { %s91_s23 = ssub.s32 %s4758_s18, %s4816_s21  ;;  %p104_p0 = scmp.ne.s32.totalorder %s4754_s17, %s4750_s16 }
   0x7   : > { %p92_p1 = scmp.eq.s32.totalorder %s91_s23, 0  ;;  %p105_p2 = scmp.eq.s32.totalorder %s4812_s19, 1 }
   0x8   : > { %p110_p3 = scmp.ne.s32.totalorder %s4750_s16, %s4746_s15  ;;  %p111_p4 = scmp.eq.s32.totalorder %s3562_s20, 1 }
   0x9   : > { %s4827_s24 = scalar_select %p92_p1, %s4754_s17, %s94_s22  }
   0xa   : > { %p4831_p5 = por %p105_p2, %p104_p0  ;;  %p4835_p6 = por %p111_p4, %p110_p3 }
   0xb   : > { %p3565_p7 = scmp.ge.s32.totalorder %s4758_s18, 1  ;;  %p164_p8 = scmp.lt.s32.totalorder %s4758_s18, 3 }
   0xd   : > { %p165_p9 = pnand %p3565_p7, %p164_p8 }
   0xf   : > { %168 = sbr.rel (%p165_p9) target bundleno = 632 (0x278), region = 32 }
  0x16   : > { %s185_s27 = sand.u32 1, %s4750_s16   ;;  %p190_p10 = scmp.lt.s32.totalorder %s4812_s19, 1 }
  0x17   : > { %s4579_s28 = smul.u32 288, %s185_s27  ;;  %p3567_p11 = scmp.ne.s32.totalorder %s4812_s19, 0 }
  0x18   : > { %s191_s29 = scalar_select %p190_p10, %s4812_s19, 1 }
  0x19   : > { %s4851_s8 = scalar_lea.vmem [#allocation2], %s4579_s28  ;;  %199 = sbr.rel (%p3567_p11) target bundleno = 32 (0x20), region = 36  ;;  %v4760_v0 = vmov (!%p3567_p11), 0.0  }
  0x1a   : > { %s4580_s30 = smul.u32 172, %s191_s29  ;;  %200 = vst [vmem:[#allocation4] sm:$0x3] (!%p3567_p11), %v4760_v0 }
  0x1c   : > { %s4849_s7 = scalar_lea.vmem %s6048_s0, %s4580_s30 }
  0x20 PF: > { %vm542_vm0 = vcmask 1041408   ;;  %v4857_v1 = vld [vmem:[%s6049_s1 + $0x8] sm:$0x3]  ;;  %v3568_v2 = vld [vmem:[%s6049_s1 + $0x2] sm:$0x3]  ;;  %v4882_v11 = vld [vmem:[%s4849_s7 + $0x10] sm:$0xff]  }
  0x21   : > { %v4863_v3 = vld [vmem:[%s4849_s7] sm:$0xff]   ;;  %4573 = vmatprep.subr.msk.bf16.mxu0 %vm542_vm0, %v4857_v1  ;;  %4569 = vmatprep.subr.msk.bf16.mxu1 %vm542_vm0, %v3568_v2  ;;  %v4870_v4 = vsel %vm542_vm0, %v4857_v1, 0  ;;  %v544_v5 = vsel %vm542_vm0, %v3568_v2, 0  ;;  %v4875_v6 = vld [vmem:[%s4849_s7 + $0x8] sm:$0xff]   ;;  %vm338_vm1 = vsmask.f32 7424 }
  0x22   : > { %6084 = vst [vmem:[#allocation8_spill] sm:$0xff] %v4870_v4  ;;  %4090 = vmatpush3.bf16.msra.mxu0 %v4870_v4  ;;  %3938 = vmatpush3.bf16.msra.mxu1 %v544_v5  ;;  %v340_v7 = vshrl.u32 %v4863_v3, 16  ;;  %v342_v8 = vshll.u32 %v4863_v3, 16  ;;  %v347_v9 = vshll.u32 %v4875_v6, 16  ;;  %v351_v10 = vshrl.u32 %v4875_v6, 16  ;;  %v4885_v12 = vld [vmem:[%s4849_s7 + $0x18] sm:$0xff]  }
  0x23   : > { %vm487_vm2 = vcmask 31744   ;;  %vm1485_vm3 = vsmask.f32 6400  ;;  %v3683_v14 = vld [vmem:[%s6049_s1 + $0xa] sm:$0x3]  ;;  %v4891_v16 = vshll.u32 %v4882_v11, 16 }
  0x24   : > { %v344_v13 = vrot.slane %v342_v8, 1  ;;  %v349_v15 = vrot.slane %v347_v9, 1  ;;  %v4894_v17 = vshrl.u32 %v4882_v11, 16  ;;  %v1486_v18 = vrot.slane %v351_v10, 1  ;;  %4575 = vmatprep.subr.msk.bf16.mxu0 %vm542_vm0, %v3683_v14  ;;  %v4904_v23 = vld [vmem:[%s4849_s7 + $0x20] sm:$0xff]   ;;  %v4913_v29 = vld [vmem:[%s4849_s7 + $0x28] sm:$0xff]  }
  0x25   : > { %v1487_v20 = vrot.slane %v347_v9, 2  ;;  %v4898_v21 = vshll.u32 %v4885_v12, 16  ;;  %v4901_v22 = vshrl.u32 %v4885_v12, 16  ;;  %v1490_v26 = vrot.slane %v4891_v16, 2  ;;  %v242_v28 = vld [vmem:[%s6049_s1] sm:$0x3] }
  0x26   : > { %v345_v19 = vor.u32 %v344_v13, %v340_v7  ;;  %v353_v24 = vor.u32 %v351_v10, %v349_v15  ;;  %v1489_v25 = vrot.slane %v4894_v17, 1  ;;  %v357_v27 = vrot.slane %v4891_v16, 1  ;;  %4570 = vmatprep.subr.msk.bf16.mxu1 %vm542_vm0, %v242_v28  ;;  %v4932_v42 = vld [vmem:[%s4849_s7 + $0x30] sm:$0xff]   ;;  %v4943_v47 = vld [vmem:[%s4849_s7 + $0x38] sm:$0xff]   ;;  %v4964_v60 = vld [vmem:[%s4849_s7 + $0x40] sm:$0xff]   ;;  %s3478_s20 = sshll.u32 %s4851_s8, 4  ;;  %s5979_s20 = int_to_ptr.vmem [resolvable:$true] %s3478_s20 }
  0x27   : > { %v1488_v31 = vor.u32 %v1487_v20, %v1486_v18  ;;  %v1493_v32 = vrot.slane %v4901_v22, 1  ;;  %v1494_v33 = vrot.slane %v4898_v21, 2  ;;  %v1936_v36 = vsel %vm542_vm0, %v3683_v14, 0  ;;  %v4981_v13 = vld [vmem:[%s4849_s7 + $0x48] sm:$0xff]   ;;  %v4990_v20 = vld [vmem:[%s4849_s7 + $0x50] sm:$0xff]   ;;  %s5985_s29 = scalar_lea.sflag [#allocation3], %s185_s27 }
  0x28   : > { %v350_v30 = vsel %vm338_vm1, %v345_v19, %v349_v15  ;;  %v1491_v34 = vor.u32 %v1490_v26, %v1489_v25  ;;  %v358_v35 = vsel %vm338_vm1, %v353_v24, %v357_v27  ;;  %v361_v37 = vor.u32 %v4894_v17, %v357_v27  ;;  %v4995_v24 = vld [vmem:[%s6049_s1 + $0xc] sm:$0x3]  ;;  %s4666_s30 = scalar_lea.vmem %s5979_s20, 4608  ;;  %s4762_s5 = smov [#allocation2]  }
  0x29   : > { %3939 = vmatprep.mubr.msk.bf16.mxu1 %vm487_vm2, %v350_v30  ;;  %v1495_v38 = vor.u32 %v1494_v33, %v1493_v32  ;;  %v365_v39 = vrot.slane %v4898_v21, 1  ;;  %v4926_v40 = vshll.u32 %v4904_v23, 16  ;;  %v4929_v41 = vshrl.u32 %v4904_v23, 16  ;;  %p4667_p12 = scmp.ne.s32.totalorder %s5979_s20, %s4666_s30  ;;  %s4670_s6 = sshll.u32 %s4762_s5, 4  ;;  %s4671_s6 = int_to_ptr.vmem [resolvable:$false] %s4670_s6 }
  0x2a   : > { %3940 = vmatmul.mubr.msk.bf16.vlgmr.msra.gmra.mrb[0].mxu1 %vm487_vm2, %v358_v35  ;;  %v1492_v43 = vsel %vm1485_vm3, %v1488_v31, %v1491_v34  ;;  %v760_v44 = vsel %vm542_vm0, %v242_v28, 0  ;;  %v4937_v45 = vshll.u32 %v4913_v29, 16  ;;  %v4940_v46 = vshrl.u32 %v4913_v29, 16  ;;  %s4672_s9 = scalar_lea.vmem %s4671_s6, 9216  ;;  %p4673_p1 = scmp.lt.s32.totalorder %s5979_s20, %s4671_s6 }
  0x2b   : > { %4091 = vmatprep.mubr.msk.bf16.mxu0 %vm487_vm2, %v1492_v43  ;;  %v1496_v48 = vsel %vm1485_vm3, %v1491_v34, %v1495_v38  ;;  %v366_v49 = vsel %vm338_vm1, %v361_v37, %v365_v39  ;;  %v1497_v50 = vrot.slane %v4929_v41, 1  ;;  %v1498_v51 = vrot.slane %v4926_v40, 2  ;;  %3976 = vmatpush3.bf16.msra.mxu1 %v760_v44  ;;  %p4668_p13 = pnand %p4667_p12, %p4831_p5  ;;  %p4674_p3 = scmp.lt.s32.totalorder %s4672_s9, %s4666_s30 }
  0x2c   : > { %4092 = vmatmul.mubr.msk.bf16.vlgmr.msra.gmra.mrb[0].mxu0 %vm487_vm2, %v1496_v48  ;;  %3943 = vmatprep.mubr.msk.bf16.mxu1 %vm487_vm2, %v366_v49  ;;  %v369_v52 = vor.u32 %v4901_v22, %v365_v39  ;;  %v373_v53 = vrot.slane %v4926_v40, 1  ;;  %v1501_v54 = vrot.slane %v4940_v46, 1  ;;  %v1502_v55 = vrot.slane %v4937_v45, 2 }
  0x2d   : > { %4128 = vmatpush3.bf16.msra.mxu0 %v1936_v36  ;;  %v1499_v56 = vor.u32 %v1498_v51, %v1497_v50  ;;  %v381_v57 = vrot.slane %v4937_v45, 1  ;;  %v4958_v58 = vshll.u32 %v4932_v42, 16  ;;  %v4961_v59 = vshrl.u32 %v4932_v42, 16  ;;  %p4669_p0 = pneg %p4668_p13  ;;  %p4675_p4 = por %p4674_p3, %p4673_p1 }
  0x2e   : > { %v374_v61 = vsel %vm338_vm1, %v369_v52, %v373_v53  ;;  %v1503_v62 = vor.u32 %v1502_v55, %v1501_v54  ;;  %v377_v63 = vor.u32 %v4929_v41, %v373_v53  ;;  %v4969_v0 = vshll.u32 %v4943_v47, 16  ;;  %4576 = vmatprep.subr.msk.bf16.mxu0 %vm542_vm0, %v4995_v24  ;;  %v5032_v52 = vld [vmem:[%s4849_s7 + $0x58] sm:$0xff]  }
  0x2f   : > { %v1500_v2 = vsel %vm1485_vm3, %v1495_v38, %v1499_v56  ;;  %v1505_v5 = vrot.slane %v4961_v59, 1  ;;  %v1506_v7 = vrot.slane %v4958_v58, 2  ;;  %v4978_v10 = vshrl.u32 %v4943_v47, 16  ;;  %p4676_p7 = pnand %p4675_p4, %p4669_p0 }
  0x30   : > { %4095 = vmatprep.mubr.msk.bf16.mxu0 %vm487_vm2, %v1500_v2  ;;  %v1504_v8 = vsel %vm1485_vm3, %v1499_v56, %v1503_v62  ;;  %v382_v9 = vsel %vm338_vm1, %v377_v63, %v381_v57  ;;  %v389_v15 = vrot.slane %v4958_v58, 1  ;;  %v1510_v18 = vrot.slane %v4969_v0, 2 }
  0x31   : > { %v1507_v14 = vor.u32 %v1506_v7, %v1505_v5  ;;  %v4987_v19 = vshll.u32 %v4964_v60, 16  ;;  %v385_v25 = vor.u32 %v4940_v46, %v381_v57  ;;  %v1509_v26 = vrot.slane %v4978_v10, 1 }
  0x32   : > { %3944 = vmatmul.mubr.msk.bf16.gmra.mrb[4].mxu1 %vm487_vm2, %v374_v61  ;;  %v5001_v27 = vshrl.u32 %v4964_v60, 16  ;;  %v393_v30 = vor.u32 %v4961_v59, %v389_v15  ;;  %v397_v31 = vrot.slane %v4969_v0, 1  ;;  %v5013_v35 = vshll.u32 %v4981_v13, 16 }
  0x33   : > { %3947 = vmatprep.mubr.msk.bf16.mxu1 %vm487_vm2, %v382_v9  ;;  %v1508_v28 = vsel %vm1485_vm3, %v1503_v62, %v1507_v14  ;;  %v1514_v32 = vrot.slane %v4987_v19, 2  ;;  %v1511_v34 = vor.u32 %v1510_v18, %v1509_v26  ;;  %v5016_v36 = vshrl.u32 %v4981_v13, 16  ;;  %v5044_v62 = vld [vmem:[%s6049_s1 + $0x4] sm:$0x3] }
  0x34   : > { %4096 = vmatmul.mubr.msk.bf16.gmra.mrb[4].mxu0 %vm487_vm2, %v1504_v8  ;;  %v1513_v33 = vrot.slane %v5001_v27, 1  ;;  %v390_v37 = vsel %vm338_vm1, %v385_v25, %v389_v15  ;;  %v5020_v39 = vshll.u32 %v4990_v20, 16  ;;  %v398_v43 = vsel %vm338_vm1, %v393_v30, %v397_v31  ;;  %4571 = vmatprep.subr.msk.bf16.mxu1 %vm542_vm0, %v5044_v62  ;;  %v5064_v26 = vld [vmem:[%s4849_s7 + $0x60] sm:$0xff]  }
  0x35   : > { %4099 = vmatprep.mubr.msk.bf16.mxu0 %vm487_vm2, %v1508_v28  ;;  %v5024_v44 = vshrl.u32 %v4990_v20, 16  ;;  %v1512_v48 = vsel %vm1485_vm3, %v1507_v14, %v1511_v34  ;;  %v405_v49 = vrot.slane %v4987_v19, 1  ;;  %v1517_v50 = vrot.slane %v5016_v36, 1 }
  0x36   : > { %v1515_v38 = vor.u32 %v1514_v32, %v1513_v33  ;;  %v1518_v51 = vrot.slane %v5013_v35, 2  ;;  %v401_v54 = vor.u32 %v4978_v10, %v397_v31  ;;  %v1522_v56 = vrot.slane %v5020_v39, 2  ;;  %v5072_v33 = vld [vmem:[%s4849_s7 + $0x68] sm:$0xff]  }
  0x37   : > { %v1521_v55 = vrot.slane %v5024_v44, 1  ;;  %v409_v57 = vor.u32 %v5001_v27, %v405_v49  ;;  %v413_v61 = vrot.slane %v5013_v35, 1  ;;  %v5051_v2 = vshll.u32 %v5032_v52, 16 }
  0x38   : > { %v1516_v53 = vsel %vm1485_vm3, %v1511_v34, %v1515_v38  ;;  %v1519_v63 = vor.u32 %v1518_v51, %v1517_v50  ;;  %v5054_v5 = vshrl.u32 %v5032_v52, 16  ;;  %v406_v7 = vsel %vm338_vm1, %v401_v54, %v405_v49 }
  0x39   : > { %6085 = vst [vmem:[#allocation9_spill] sm:$0xff] %v5051_v2  ;;  %v1523_v8 = vor.u32 %v1522_v56, %v1521_v55  ;;  %v414_v9 = vsel %vm338_vm1, %v409_v57, %v413_v61  ;;  %v421_v15 = vrot.slane %v5020_v39, 1  ;;  %v1526_v25 = vrot.slane %v5051_v2, 2  ;;  %v5096_v55 = vld [vmem:[%s4849_s7 + $0x70] sm:$0xff]  }
  0x3a   : > { %3948 = vmatmul.mubr.msk.bf16.gmra.mrb[8].mxu1 %vm487_vm2, %v390_v37  ;;  %6086 = vst [vmem:[#allocation10_spill] sm:$0xff] %v5054_v5  ;;  %v1520_v14 = vsel %vm1485_vm3, %v1515_v38, %v1519_v63  ;;  %v1525_v18 = vrot.slane %v5054_v5, 1  ;;  %v417_v30 = vor.u32 %v5016_v36, %v413_v61  ;;  %v429_v32 = vrot.slane %v5051_v2, 1 }
  0x3b   : > { %3951 = vmatprep.mubr.msk.bf16.mxu1 %vm487_vm2, %v398_v43  ;;  %v1524_v28 = vsel %vm1485_vm3, %v1519_v63, %v1523_v8  ;;  %v425_v31 = vor.u32 %v5024_v44, %v421_v15  ;;  %v5079_v37 = vshll.u32 %v5064_v26, 16  ;;  %v1844_v43 = vrot.slane %v4875_v6, 2 }
  0x3c   : > { %4100 = vmatmul.mubr.msk.bf16.gmra.mrb[8].mxu0 %vm487_vm2, %v1512_v48  ;;  %v5076_v34 = vor.u32 %v1526_v25, %v1525_v18  ;;  %v422_v38 = vsel %vm338_vm1, %v417_v30, %v421_v15  ;;  %v1845_v48 = vrot.slane %v4882_v11, 2  ;;  %vm1843_vm4 = vcmask 1045504  }
  0x3d   : > { %4103 = vmatprep.mubr.msk.bf16.mxu0 %vm487_vm2, %v1516_v53  ;;  %6088 = vst [vmem:[#allocation12_spill] sm:$0xff] %v5079_v37  ;;  %v430_v49 = vsel %vm338_vm1, %v425_v31, %v429_v32  ;;  %v5086_v50 = vshrl.u32 %v5064_v26, 16  ;;  %v5089_v51 = vshll.u32 %v5072_v33, 16  ;;  %v437_v54 = vrot.slane %v5079_v37, 1  ;;  %v238_v31 = vld [vmem:[%s4849_s7 + $0x94] sm:$0xf] }
  0x3e   : > { %6087 = vst [vmem:[#allocation11_spill] sm:$0xff] %v5076_v34  ;;  %v1528_v53 = vsel %vm1485_vm3, %v1523_v8, %v5076_v34  ;;  %v1846_v56 = vsel %vm1843_vm4, %v1844_v43, %v1845_v48  ;;  %v433_v57 = vor.u32 %v5054_v5, %v429_v32  ;;  %v1847_v8 = vrot.slane %v4885_v12, 2  ;;  %v5131_v43 = vld [vmem:[%s4849_s7 + $0x80] sm:$0xff]  }
  0x3f   : > { %6089 = vst [vmem:[#allocation13_spill] sm:$0xff] %v5086_v50  ;;  %6090 = vst [vmem:[#allocation14_spill] sm:$0xff] %v5089_v51  ;;  %v441_v61 = vor.u32 %v5086_v50, %v437_v54  ;;  %v445_v63 = vrot.slane %v5089_v51, 1  ;;  %v1849_v15 = vrot.slane %v4904_v23, 2  ;;  %v5115_v18 = vshrl.u32 %v5072_v33, 16 }
  0x40   : > { %v5127_v32 = vsel %vm1843_vm4, %v1845_v48, %v1847_v8  ;;  %v5166_v34 = vshll.u32 %v5131_v43, 16  ;;  %vm2387_vm5 = vsmask.f32 5376  ;;  %v2395_v5 = vrot.slane %v4929_v41, 2 }
  0x41   : > { %6092 = vst [vmem:[#allocation16_spill] sm:$0xff] %v5115_v18  ;;  %v446_v25 = vsel %vm338_vm1, %v441_v61, %v445_v63  ;;  %v5144_v61 = vld [vmem:[%s4849_s7 + $0x88] sm:$0xff]   ;;  %vm941_vm6 = vcmask 1046528   ;;  %vm2745_vm7 = vcmask 1044480  }
  0x42   : > { %3952 = vmatmul.mubr.msk.bf16.gmra.mrb[12].mxu1 %vm487_vm2, %v406_v7  ;;  %v5104_v7 = vld [vmem:[%s4849_s7 + $0x78] sm:$0xff]   ;;  %6097 = vst [vmem:[#allocation21_spill] sm:$0xff] %v5166_v34  ;;  %v5180_v51 = vshll.u32 %v5144_v61, 16  ;;  %v469_v37 = vrot.slane %v5166_v34, 1  ;;  %v2388_v34 = vrot.slane %v4894_v17, 2 }
  0x43   : > { %3955 = vmatprep.mubr.msk.bf16.mxu1 %vm487_vm2, %v414_v9  ;;  %v5110_v9 = vshll.u32 %v5096_v55, 16  ;;  %v5122_v30 = vshll.u32 %v5104_v7, 16 }
  0x44   : > { %4104 = vmatmul.mubr.msk.bf16.gmra.mrb[12].mxu0 %vm487_vm2, %v1520_v14  ;;  %v438_v14 = vsel %vm338_vm1, %v433_v57, %v437_v54  ;;  %v449_v54 = vor.u32 %v5115_v18, %v445_v63  ;;  %v240_v63 = vld [vmem:[%s4849_s7 + $0x9c] sm:$0xf]  ;;  %6099 = vst [vmem:[#allocation23_spill] sm:$0xff] %v5180_v51 }
  0x45   : > { %4107 = vmatprep.mubr.msk.bf16.mxu0 %vm487_vm2, %v1524_v28  ;;  %6091 = vst [vmem:[#allocation15_spill] sm:$0xff] %v5110_v9  ;;  %v5119_v28 = vshrl.u32 %v5096_v55, 16  ;;  %6094 = vst [vmem:[#allocation18_spill] sm:$0xff] %v5122_v30  ;;  %v461_v48 = vrot.slane %v5122_v30, 1 }
  0x47   : > { %6093 = vst [vmem:[#allocation17_spill] sm:$0xff] %v5119_v28 }
  0x4a   : > { %3956 = vmatmul.mubr.msk.bf16.gmra.mrb[16].mxu1 %vm487_vm2, %v422_v38  ;;  %v453_v38 = vrot.slane %v5110_v9, 1  ;;  %v1853_v9 = vrot.slane %v4932_v42, 2 }
  0x4b   : > { %3959 = vmatprep.mubr.msk.bf16.mxu1 %vm487_vm2, %v430_v49  ;;  %v2170_v49 = vsel %vm542_vm0, %v4995_v24, 0  ;;  %v5151_v24 = vld [vmem:[%s6049_s1 + $0xe] sm:$0x3] }
  0x4c   : > { %4108 = vmatmul.mubr.msk.bf16.gmra.mrb[16].mxu0 %vm487_vm2, %v1528_v53  ;;  %v5137_v53 = vsel %vm1843_vm4, %v1847_v8, %v1849_v15  ;;  %v457_v57 = vor.u32 %v5119_v28, %v453_v38  ;;  %v5156_v8 = vld [vmem:[%s4849_s7 + $0x98] sm:$0xf]  ;;  %v454_v4 = vsel %vm338_vm1, %v449_v54, %v453_v38 }
  0x4d   : > { %4129 = vmatprep.mubr.msk.bf16.mxu0 %vm487_vm2, %v1846_v56  ;;  %v237_v56 = vld [vmem:[%s4849_s7 + $0x90] sm:$0xf]  ;;  %v5169_v30 = vcombine.low %v5156_v8, %v240_v63 }
  0x4e   : > { %v462_v28 = vsel %vm338_vm1, %v457_v57, %v461_v48  ;;  %v5202_v50 = vcombine.low %v237_v56, %v237_v56 }
  0x4f   : > { %v6073_v63 = vrot.slane %v5169_v30, 2 }
  0x52   : > { %3960 = vmatmul.mubr.msk.bf16.gmra.mrb[20].mxu1 %vm487_vm2, %v438_v14  ;;  %v5146_v14 = vcombine.low %v237_v56, %v238_v31  ;;  %v5163_v31 = vshrl.u32 %v5104_v7, 16  ;;  %v1857_v56 = vrot.slane %v4964_v60, 2 }
  0x53   : > { %3963 = vmatprep.mubr.msk.bf16.mxu1 %vm487_vm2, %v446_v25  ;;  %v1851_v25 = vrot.slane %v4913_v29, 2 }
  0x54   : > { %6095 = vst [vmem:[#allocation19_spill] sm:$0xff] %v5146_v14  ;;  %4130 = vmatmul.mubr.msk.bf16.vlgmr.msra.gmra.mrb[0].mxu0 %vm487_vm2, %v5127_v32  ;;  %6096 = vst [vmem:[#allocation20_spill] sm:$0xff] %v5163_v31  ;;  %v5183_v18 = vrot.slane %v5146_v14, 2  ;;  %v465_v54 = vor.u32 %v5163_v31, %v461_v48  ;;  %v1855_v48 = vrot.slane %v4943_v47, 2  ;;  %v483_v31 = vshll.u32 %v5202_v50, 16 }
  0x55   : > { %4166 = vmatpush3.bf16.msra.mxu0 %v2170_v49  ;;  %4133 = vmatprep.mubr.msk.bf16.mxu0 %vm487_vm2, %v5137_v53  ;;  %v5174_v49 = vshrl.u32 %v5131_v43, 16  ;;  %v5188_v38 = vsel %vm1843_vm4, %v1849_v15, %v1851_v25  ;;  %v5200_v14 = vsel %vm1843_vm4, %v1851_v25, %v1853_v9  ;;  %v477_v15 = vrot.slane %v5180_v51, 1 }
  0x56   : > { %4577 = vmatprep.subr.msk.bf16.mxu0 %vm542_vm0, %v5151_v24  ;;  %v5196_v57 = vsel %vm1843_vm4, %v5183_v18, %v6073_v63  ;;  %v2389_v63 = vrot.slane %v4891_v16, 3  ;;  %v2391_v25 = vrot.slane %v4901_v22, 2  ;;  %v2392_v51 = vrot.slane %v4898_v21, 3 }
  0x57   : > { %6098 = vst [vmem:[#allocation22_spill] sm:$0xff] %v5174_v49  ;;  %v5226_v22 = vsel %vm1843_vm4, %v1853_v9, %v1855_v48  ;;  %v2400_v9 = vrot.slane %v4937_v45, 3 }
  0x58   : > { %v2390_v17 = vor.u32 %v2389_v63, %v2388_v34  ;;  %v2393_v2 = vor.u32 %v2392_v51, %v2391_v25  ;;  %v5233_v34 = vsel %vm1843_vm4, %v1855_v48, %v1857_v56  ;;  %v485_v63 = vrot.slane %v483_v31, 1 }
  0x59   : > { %v2404_v48 = vrot.slane %v4958_v58, 3 }
  0x5a   : > { %3964 = vmatmul.mubr.msk.bf16.gmra.mrb[24].mxu1 %vm487_vm2, %v454_v4  ;;  %v473_v4 = vor.u32 %v5174_v49, %v469_v37  ;;  %v5218_v49 = vshrl.u32 %v5144_v61, 16  ;;  %v5229_v21 = vsel %vm2387_vm5, %v2390_v17, %v2393_v2  ;;  %v1863_v17 = vrot.slane %v5032_v52, 2 }
  0x5b   : > { %3967 = vmatprep.mubr.msk.bf16.mxu1 %vm487_vm2, %v462_v28  ;;  %v470_v28 = vsel %vm338_vm1, %v465_v54, %v469_v37  ;;  %v2396_v37 = vrot.slane %v4926_v40, 3  ;;  %v1859_v40 = vrot.slane %v4981_v13, 2 }
  0x5c   : > { %4134 = vmatmul.mubr.msk.bf16.gmra.mrb[4].mxu0 %vm487_vm2, %v5188_v38  ;;  %v478_v16 = vsel %vm338_vm1, %v473_v4, %v477_v15  ;;  %v481_v51 = vor.u32 %v5218_v49, %v477_v15  ;;  %v1861_v15 = vrot.slane %v4990_v20, 2 }
  0x5d   : > { %4137 = vmatprep.mubr.msk.bf16.mxu0 %vm487_vm2, %v5200_v14  ;;  %v2397_v54 = vor.u32 %v2396_v37, %v2395_v5  ;;  %v2399_v5 = vrot.slane %v4940_v46, 2 }
  0x5e   : > { %v486_v4 = vsel %vm338_vm1, %v481_v51, %v485_v63  ;;  %v5260_v45 = vsel %vm1843_vm4, %v1859_v40, %v1861_v15  ;;  %v2411_v51 = vrot.slane %v5001_v27, 2  ;;  %v2412_v63 = vrot.slane %v4987_v19, 3 }
  0x5f   : > { %v5237_v41 = vsel %vm2387_vm5, %v2393_v2, %v2397_v54  ;;  %v2401_v31 = vor.u32 %v2400_v9, %v2399_v5  ;;  %v2403_v2 = vrot.slane %v4961_v59, 2  ;;  %v2407_v59 = vrot.slane %v4978_v10, 2  ;;  %v5280_v10 = vld [vmem:[%s6049_s1 + $0x6] sm:$0x3] }
  0x60   : > { %v2413_v5 = vor.u32 %v2412_v63, %v2411_v51  ;;  %v2416_v9 = vrot.slane %v5013_v35, 3  ;;  %v5357_v51 = vcombine.low %v5156_v8, %v5156_v8 }
  0x61   : > { %v5255_v25 = vsel %vm2387_vm5, %v2397_v54, %v2401_v31  ;;  %v2405_v46 = vor.u32 %v2404_v48, %v2403_v2  ;;  %v1034_v54 = vsel %vm542_vm0, %v5044_v62, 0  ;;  %v2415_v62 = vrot.slane %v5016_v36, 2 }
  0x62   : > { %3968 = vmatmul.mubr.msk.bf16.gmra.mrb[28].mxu1 %vm487_vm2, %v470_v28  ;;  %v5252_v28 = vsel %vm1843_vm4, %v1857_v56, %v1859_v40  ;;  %v2408_v56 = vrot.slane %v4969_v0, 3  ;;  %v5288_v40 = vsel %vm1843_vm4, %v1861_v15, %v1863_v17  ;;  %v1869_v15 = vrot.slane %v5096_v55, 2 }
  0x63   : > { %3971 = vmatprep.mubr.msk.bf16.mxu1 %vm487_vm2, %v478_v16  ;;  %v5265_v58 = vsel %vm2387_vm5, %v2401_v31, %v2405_v46  ;;  %v1865_v16 = vrot.slane %v5064_v26, 2  ;;  %v2417_v31 = vor.u32 %v2416_v9, %v2415_v62  ;;  %v2419_v2 = vrot.slane %v5024_v44, 2  ;;  %v3093_v9 = vld [vmem:[%s6050_s2 + $0x20] sm:$0xff] }
  0x64   : > { %4138 = vmatmul.mubr.msk.bf16.gmra.mrb[8].mxu0 %vm487_vm2, %v5226_v22  ;;  %v2409_v37 = vor.u32 %v2408_v56, %v2407_v59  ;;  %v2420_v48 = vrot.slane %v5020_v39, 3  ;;  %v1871_v44 = vrot.slane %v5104_v7, 2  ;;  %v1873_v56 = vrot.slane %v5131_v43, 2 }
  0x65   : > { %4141 = vmatprep.mubr.msk.bf16.mxu0 %vm487_vm2, %v5233_v34  ;;  %v5293_v19 = vsel %vm1843_vm4, %v1863_v17, %v1865_v16  ;;  %v2528_v62 = vsel %vm542_vm0, %v5151_v24, 0  ;;  %v945_v24 = vrot.slane %v4882_v11, 1 }
  0x66   : > { %v5283_v0 = vsel %vm2387_vm5, %v2405_v46, %v2409_v37  ;;  %v5298_v27 = vsel %vm2387_vm5, %v2409_v37, %v2413_v5  ;;  %v5311_v46 = vsel %vm2387_vm5, %v2413_v5, %v2417_v31  ;;  %v5318_v36 = vor.u32 %v2420_v48, %v2419_v2  ;;  %v3096_v48 = vld [vmem:[%s6050_s2 + $0x38] sm:$0xff] }
  0x67   : > { %v5338_v17 = vsel %vm1843_vm4, %v1869_v15, %v1871_v44  ;;  %v1875_v37 = vrot.slane %v5144_v61, 2  ;;  %v1879_v5 = vrot.slane %v5357_v51, 2  ;;  %v959_v2 = vrot.slane %v4981_v13, 1 }
  0x68   : > { %v5327_v39 = vsel %vm2387_vm5, %v2417_v31, %v5318_v36  ;;  %v957_v31 = vrot.slane %v4964_v60, 1 }
  0x69   : > { %v5363_v63 = vsel %vm1843_vm4, %v1875_v37, %v5183_v18  ;;  %v1880_v8 = vsel %vm1843_vm4, %v5183_v18, %v1879_v5  ;;  %v5388_v18 = vld [vmem:[%s6049_s1 + $0x10] sm:$0x3] }
  0x6a   : > { %3972 = vmatmul.mubr.msk.bf16.gmra.mrb[32].mxu1 %vm487_vm2, %v486_v4  ;;  %v1867_v4 = vrot.slane %v5072_v33, 2 }
  0x6b   : > { %3977 = vmatprep.mubr.msk.bf16.mxu1 %vm487_vm2, %v4863_v3 }
  0x6c   : > { %4142 = vmatmul.mubr.msk.bf16.gmra.mrb[12].mxu0 %vm487_vm2, %v5252_v28  ;;  %v5316_v35 = vsel %vm1843_vm4, %v1865_v16, %v1867_v4  ;;  %v5323_v59 = vsel %vm1843_vm4, %v1867_v4, %v1869_v15  ;;  %v5343_v16 = vsel %vm1843_vm4, %v1871_v44, %v1873_v56  ;;  %v3095_v15 = vld [vmem:[%s6050_s2 + $0x30] sm:$0xff] }
  0x6d   : > { %4145 = vmatprep.mubr.msk.bf16.mxu0 %vm487_vm2, %v5260_v45  ;;  %v3099_v44 = vld [vmem:[%s6050_s2 + $0x50] sm:$0xff] }
  0x72   : > { %3978 = vmatmul.mubr.msk.bf16.vlgmr.msra.gmra.mrb[0].mxu1 %vm487_vm2, %v4875_v6 }
  0x73   : > { %3981 = vmatprep.mubr.msk.bf16.mxu1 %vm487_vm2, %v4882_v11  ;;  %4014 = vmatpush3.bf16.msra.mxu1 %v1034_v54  ;;  %v5353_v54 = vsel %vm1843_vm4, %v1873_v56, %v1875_v37  ;;  %v1268_v11 = vsel %vm542_vm0, %v5280_v10, 0  ;;  %v5518_v56 = vld [vmem:[%s4849_s7 + $0xa0] ss:$0 sps:$4 sm:$0xff]   ;;  %v3100_v37 = vld [vmem:[%s6050_s2 + $0x58] sm:$0xff] }
  0x74   : > { %4572 = vmatprep.subr.msk.bf16.mxu1 %vm542_vm0, %v5280_v10  ;;  %4146 = vmatmul.mubr.msk.bf16.gmra.mrb[16].mxu0 %vm487_vm2, %v5288_v40  ;;  %v953_v10 = vrot.slane %v4932_v42, 1  ;;  %v2161_v5 = vrot.slane %v5518_v56, 2 }
  0x75   : > { %4149 = vmatprep.mubr.msk.bf16.mxu0 %vm487_vm2, %v5293_v19 }
  0x7a   : > { %3982 = vmatmul.mubr.msk.bf16.gmra.mrb[4].mxu1 %vm487_vm2, %v4885_v12 }
  0x7b   : > { %3985 = vmatprep.mubr.msk.bf16.mxu1 %vm487_vm2, %v4904_v23 }
  0x7c   : > { %4150 = vmatmul.mubr.msk.bf16.gmra.mrb[20].mxu0 %vm487_vm2, %v5316_v35 }
  0x7d   : > { %4153 = vmatprep.mubr.msk.bf16.mxu0 %vm487_vm2, %v5323_v59 }
  0x82   : > { %3986 = vmatmul.mubr.msk.bf16.gmra.mrb[8].mxu1 %vm487_vm2, %v4913_v29 }
  0x83   : > { %3989 = vmatprep.mubr.msk.bf16.mxu1 %vm487_vm2, %v4932_v42  ;;  %v3094_v42 = vld [vmem:[%s6050_s2 + $0x28] sm:$0xff] }
  0x84   : > { %4154 = vmatmul.mubr.msk.bf16.gmra.mrb[24].mxu0 %vm487_vm2, %v5338_v17 }
  0x85   : > { %4157 = vmatprep.mubr.msk.bf16.mxu0 %vm487_vm2, %v5343_v16 }
  0x8a   : > { %3990 = vmatmul.mubr.msk.bf16.gmra.mrb[12].mxu1 %vm487_vm2, %v4943_v47 }
  0x8b   : > { %3993 = vmatprep.mubr.msk.bf16.mxu1 %vm487_vm2, %v4964_v60 }
  0x8c   : > { %4158 = vmatmul.mubr.msk.bf16.gmra.mrb[28].mxu0 %vm487_vm2, %v5353_v54 }
  0x8d   : > { %4161 = vmatprep.mubr.msk.bf16.mxu0 %vm487_vm2, %v5363_v63 }
  0x92   : > { %3994 = vmatmul.mubr.msk.bf16.gmra.mrb[16].mxu1 %vm487_vm2, %v4981_v13  ;;  %v3098_v13 = vld [vmem:[%s6050_s2 + $0x48] sm:$0xff] }
  0x93   : > { %3997 = vmatprep.mubr.msk.bf16.mxu1 %vm487_vm2, %v4990_v20 }
  0x94   : > { %4162 = vmatmul.mubr.msk.bf16.gmra.mrb[32].mxu0 %vm487_vm2, %v1880_v8 }
  0x95   : > { %4167 = vmatprep.mubr.msk.bf16.mxu0 %vm487_vm2, %v5127_v32  ;;  %v942_v32 = vrot.slane %v4863_v3, 1  ;;  %v947_v3 = vrot.slane %v4885_v12, 1  ;;  %v949_v12 = vrot.slane %v4904_v23, 1 }
  0x97   : > { %v5451_v23 = vsel %vm941_vm6, %v947_v3, %v949_v12 }
  0x9a   : > { %3998 = vmatmul.mubr.msk.bf16.gmra.mrb[20].mxu1 %vm487_vm2, %v5032_v52 }
  0x9b   : > { %4001 = vmatprep.mubr.msk.bf16.mxu1 %vm487_vm2, %v5064_v26 }
  0x9c   : > { %4168 = vmatmul.mubr.msk.bf16.vlgmr.msra.gmra.mrb[0].mxu0 %vm487_vm2, %v5137_v53  ;;  %v943_v53 = vrot.slane %v4875_v6, 1 }
  0x9d   : > { %4204 = vmatpush3.bf16.msra.mxu0 %v2528_v62  ;;  %4171 = vmatprep.mubr.msk.bf16.mxu0 %vm487_vm2, %v5188_v38  ;;  %v4761_v38 = vmov 0   ;;  %v3103_v62 = vld [vmem:[%s6050_s2 + $0x70] sm:$0xff] }
  0x9e   : > { %4578 = vmatprep.subr.msk.bf16.mxu0 %vm542_vm0, %v5388_v18  ;;  %v5425_v6 = vsel %vm941_vm6, %v943_v53, %v945_v24  ;;  %4632 = vset.pattern.permute.xlu0 %v4761_v38 }
  0x9f   : > { %4633 = vset.pattern.permute.xlu1 %v4761_v38 }
  0xa2   : > { %4002 = vmatmul.mubr.msk.bf16.gmra.mrb[24].mxu1 %vm487_vm2, %v5072_v33 }
  0xa3   : > { %4005 = vmatprep.mubr.msk.bf16.mxu1 %vm487_vm2, %v5096_v55 }
  0xa4   : > { %4172 = vmatmul.mubr.msk.bf16.gmra.mrb[4].mxu0 %vm487_vm2, %v5200_v14  ;;  %v944_v14 = vsel %vm941_vm6, %v942_v32, %v943_v53  ;;  %v965_v53 = vrot.slane %v5064_v26, 1 }
  0xa5   : > { %4175 = vmatprep.mubr.msk.bf16.mxu0 %vm487_vm2, %v5226_v22  ;;  %v5428_v22 = vsel %vm941_vm6, %v945_v24, %v947_v3  ;;  %v3104_v24 = vld [vmem:[%s6050_s2 + $0x78] sm:$0xff]  ;;  %v3105_v3 = vld [vmem:[%s6050_s2 + $0x80] sm:$0xff] }
  0xaa   : > { %4006 = vmatmul.mubr.msk.bf16.gmra.mrb[28].mxu1 %vm487_vm2, %v5104_v7 }
  0xab   : > { %4009 = vmatprep.mubr.msk.bf16.mxu1 %vm487_vm2, %v5131_v43 }
  0xac   : > { %4176 = vmatmul.mubr.msk.bf16.gmra.mrb[8].mxu0 %vm487_vm2, %v5233_v34  ;;  %v951_v34 = vrot.slane %v4913_v29, 1 }
  0xad   : > { %4179 = vmatprep.mubr.msk.bf16.mxu0 %vm487_vm2, %v5252_v28  ;;  %v3089_v28 = vld [vmem:[%s6050_s2] sm:$0xff] }
  0xae   : > { %3127 = vperm.xlu0 %4632, %v3089_v28   ;;  %v5457_v29 = vsel %vm941_vm6, %v949_v12, %v951_v34  ;;  %v5476_v4 = vsel %vm941_vm6, %v951_v34, %v953_v10  ;;  %v3107_v34 = vld [vmem:[%s6050_s2 + $0x90] sm:$0xff]  ;;  %v969_v28 = vrot.slane %v5096_v55, 1 }
  0xb2   : > { %4010 = vmatmul.mubr.msk.bf16.gmra.mrb[32].mxu1 %vm487_vm2, %v5144_v61 }
  0xb3   : > { %4015 = vmatprep.mubr.msk.bf16.mxu1 %vm487_vm2, %v944_v14  ;;  %v967_v14 = vrot.slane %v5072_v33, 1 }
  0xb4   : > { %4180 = vmatmul.mubr.msk.bf16.gmra.mrb[12].mxu0 %vm487_vm2, %v5260_v45  ;;  %v3091_v45 = vld [vmem:[%s6050_s2 + $0x10] sm:$0xff] }
  0xb5   : > { %4183 = vmatprep.mubr.msk.bf16.mxu0 %vm487_vm2, %v5288_v40  ;;  %3137 = vperm.xlu1 %4633, %v3091_v45   ;;  %v955_v40 = vrot.slane %v4943_v47, 1  ;;  %v5572_v12 = vsel %vm941_vm6, %v965_v53, %v967_v14  ;;  %v971_v45 = vrot.slane %v5104_v7, 1 }
  0xb7   : > { %v5482_v47 = vsel %vm941_vm6, %v953_v10, %v955_v40  ;;  %v5504_v60 = vsel %vm941_vm6, %v955_v40, %v957_v31  ;;  %v3109_v10 = vld [vmem:[%s6050_s2 + $0xa0] sm:$0xff]  ;;  %v5599_v40 = vsel %vm941_vm6, %v969_v28, %v971_v45 }
  0xba   : > { %4016 = vmatmul.mubr.msk.bf16.vlgmr.msra.gmra.mrb[0].mxu1 %vm487_vm2, %v5425_v6 }
  0xbb   : > { %4019 = vmatprep.mubr.msk.bf16.mxu1 %vm487_vm2, %v5428_v22  ;;  %4052 = vmatpush3.bf16.msra.mxu1 %v1268_v11  ;;  %v3106_v11 = vld [vmem:[%s6050_s2 + $0x88] sm:$0xff] }
  0xbc   : > { %4574 = vmatprep.subr.msk.bf16.mxu1 %vm542_vm0, %v4857_v1  ;;  %4184 = vmatmul.mubr.msk.bf16.gmra.mrb[16].mxu0 %vm487_vm2, %v5293_v19  ;;  %v3090_v1 = vld [vmem:[%s6050_s2 + $0x8] sm:$0xff]  ;;  %v3092_v19 = vld [vmem:[%s6050_s2 + $0x18] sm:$0xff] }
  0xbd   : > { %4187 = vmatprep.mubr.msk.bf16.mxu0 %vm487_vm2, %v5316_v35  ;;  %3132 = vperm.xlu0 %4632, %v3090_v1   ;;  %v3097_v35 = vld [vmem:[%s6050_s2 + $0x40] sm:$0xff]  ;;  %v3108_v1 = vld [vmem:[%s6050_s2 + $0x98] sm:$0xff] }
  0xbe   : > { %3142 = vperm.xlu1 %4633, %v3092_v19   ;;  %v3111_v19 = vld [vmem:[%s6050_s2 + $0xb0] sm:$0xff] }
  0xc1   : > { %3147 = vperm.xlu0 %4632, %v3093_v9   ;;  %v5613_v9 = vrot.slane %v5144_v61, 1 }
  0xc2   : > { %4020 = vmatmul.mubr.msk.bf16.gmra.mrb[4].mxu1 %vm487_vm2, %v5451_v23  ;;  %3152 = vperm.xlu1 %4633, %v3094_v42   ;;  %v3112_v42 = vld [vmem:[%s6050_s2 + $0xb8] sm:$0xff] }
  0xc3   : > { %4023 = vmatprep.mubr.msk.bf16.mxu1 %vm487_vm2, %v5457_v29 }
  0xc4   : > { %4188 = vmatmul.mubr.msk.bf16.gmra.mrb[20].mxu0 %vm487_vm2, %v5323_v59  ;;  %v5510_v59 = vsel %vm941_vm6, %v957_v31, %v959_v2 }
  0xc5   : > { %4191 = vmatprep.mubr.msk.bf16.mxu0 %vm487_vm2, %v5338_v17  ;;  %3157 = vperm.xlu0 %4632, %v3095_v15   ;;  %v961_v17 = vrot.slane %v4990_v20, 1  ;;  %v3113_v15 = vld [vmem:[%s6050_s2 + $0xc0] sm:$0xff] }
  0xc6   : > { %3162 = vperm.xlu1 %4633, %v3096_v48   ;;  %v3115_v48 = vld [vmem:[%s6050_s2 + $0xd0] sm:$0xff] }
  0xc7   : > { %v5536_v20 = vsel %vm941_vm6, %v959_v2, %v961_v17 }
  0xc9   : > { %3167 = vperm.xlu0 %4632, %v3097_v35   ;;  %v6101_v35 = vld [vmem:[#allocation10_spill] sm:$0xff] }
  0xca   : > { %4024 = vmatmul.mubr.msk.bf16.gmra.mrb[8].mxu1 %vm487_vm2, %v5476_v4  ;;  %3172 = vperm.xlu1 %4633, %v3098_v13   ;;  %v2423_v13 = vrot.slane %v6101_v35, 2 }
  0xcb   : > { %4027 = vmatprep.mubr.msk.bf16.mxu1 %vm487_vm2, %v5482_v47 }
  0xcc   : > { %4192 = vmatmul.mubr.msk.bf16.gmra.mrb[24].mxu0 %vm487_vm2, %v5343_v16  ;;  %v963_v16 = vrot.slane %v5032_v52, 1 }
  0xcd   : > { %4195 = vmatprep.mubr.msk.bf16.mxu0 %vm487_vm2, %v5353_v54  ;;  %3177 = vperm.xlu0 %4632, %v3099_v44   ;;  %v3101_v54 = vld [vmem:[%s6050_s2 + $0x60] sm:$0xff]  ;;  %v6102_v44 = vld [vmem:[#allocation9_spill] sm:$0xff] }
  0xce   : > { %3182 = vperm.xlu1 %4633, %v3100_v37   ;;  %v5542_v8 = vsel %vm941_vm6, %v961_v17, %v963_v16  ;;  %v5566_v38 = vsel %vm941_vm6, %v963_v16, %v965_v53  ;;  %v2424_v17 = vrot.slane %v6102_v44, 3  ;;  %v3116_v16 = vld [vmem:[%s6050_s2 + $0xd8] sm:$0xff]  ;;  %v3117_v37 = vld [vmem:[%s6050_s2 + $0xe0] sm:$0xff] }
  0xcf   : > { %v6105_v53 = vld [vmem:[#allocation16_spill] sm:$0xff] }
  0xd1   : > { %3187 = vperm.xlu0 %4632, %v3101_v54   ;;  %v2425_v54 = vor.u32 %v2424_v17, %v2423_v13  ;;  %v6112_v13 = vld [vmem:[#allocation22_spill] sm:$0xff]  ;;  %v6113_v17 = vld [vmem:[#allocation21_spill] sm:$0xff] }
  0xd2   : > { %4028 = vmatmul.mubr.msk.bf16.gmra.mrb[12].mxu1 %vm487_vm2, %v5504_v60  ;;  %v2443_v44 = vrot.slane %v6112_v13, 2 }
  0xd3   : > { %4031 = vmatprep.mubr.msk.bf16.mxu1 %vm487_vm2, %v5510_v59 }
  0xd4   : > { %4196 = vmatmul.mubr.msk.bf16.gmra.mrb[28].mxu0 %vm487_vm2, %v5363_v63  ;;  %v3102_v63 = vld [vmem:[%s6050_s2 + $0x68] sm:$0xff] }
  0xd5   : > { %4199 = vmatprep.mubr.msk.bf16.mxu0 %vm487_vm2, %v5196_v57  ;;  %v6100_v57 = vrot.slane %v5169_v30, 2  ;;  %3192 = vperm.xlu1 %4633, %v3102_v63   ;;  %v6103_v63 = vld [vmem:[#allocation13_spill] sm:$0xff] }
  0xd6   : > { %3197 = vperm.xlu0 %4632, %v3103_v62   ;;  %v2427_v62 = vrot.slane %v6103_v63, 2 }
  0xd7   : > { %v2162_v32 = vsel %vm1843_vm4, %v6100_v57, %v2161_v5  ;;  %v3118_v5 = vld [vmem:[%s6050_s2 + $0xe8] sm:$0xff] }
  0xd8   : > { %v6104_v57 = vld [vmem:[#allocation12_spill] sm:$0xff] }
  0xd9   : > { %3202 = vperm.xlu1 %4633, %v3104_v24   ;;  %v6106_v24 = vld [vmem:[#allocation14_spill] sm:$0xff] }
  0xda   : > { %4032 = vmatmul.mubr.msk.bf16.gmra.mrb[16].mxu1 %vm487_vm2, %v5536_v20  ;;  %3207 = vperm.xlu0 %4632, %v3105_v3   ;;  %v2432_v3 = vrot.slane %v6106_v24, 3 }
  0xdb   : > { %4035 = vmatprep.mubr.msk.bf16.mxu1 %vm487_vm2, %v5542_v8 }
  0xdc   : > { %4200 = vmatmul.mubr.msk.bf16.gmra.mrb[32].mxu0 %vm487_vm2, %v2162_v32  ;;  %v2426_v32 = vsel %vm2387_vm5, %v5318_v36, %v2425_v54 }
  0xdd   : > { %4205 = vmatprep.mubr.msk.bf16.mxu0 %vm487_vm2, %v5229_v21  ;;  %3212 = vperm.xlu1 %4633, %v3106_v11   ;;  %v2838_v21 = vsel %vm542_vm0, %v5388_v18, 0  ;;  %v5596_v18 = vsel %vm941_vm6, %v967_v14, %v969_v28  ;;  %v2431_v14 = vrot.slane %v6105_v53, 2  ;;  %v3120_v11 = vld [vmem:[%s6050_s2 + $0xf8] sm:$0xff]  ;;  %v3123_v28 = vld [vmem:[%s6050_s2 + $0x110] sm:$0xff] }
  0xde   : > { %3217 = vperm.xlu0 %4632, %v3107_v34  }
  0xdf   : > { %v2433_v34 = vor.u32 %v2432_v3, %v2431_v14  ;;  %v2456_v14 = vshrl.u32 %v5169_v30, 16 }
  0xe1   : > { %3222 = vperm.xlu1 %4633, %v3108_v1  }
  0xe2   : > { %4036 = vmatmul.mubr.msk.bf16.gmra.mrb[20].mxu1 %vm487_vm2, %v5566_v38  ;;  %3227 = vperm.xlu0 %4632, %v3109_v10   ;;  %v6108_v10 = vld [vmem:[#allocation15_spill] sm:$0xff] }
  0xe3   : > { %4039 = vmatprep.mubr.msk.bf16.mxu1 %vm487_vm2, %v5572_v12 }
  0xe4   : > { %4206 = vmatmul.mubr.msk.bf16.vlgmr.msra.gmra.mrb[0].mxu0 %vm487_vm2, %v5237_v41  ;;  %v3110_v41 = vld [vmem:[%s6050_s2 + $0xa8] sm:$0xff] }
  0xe5   : > { %4242 = vmatpush3.bf16.msra.mxu0 %v2838_v21  ;;  %4209 = vmatprep.mubr.msk.bf16.mxu0 %vm487_vm2, %v5255_v25  ;;  %v973_v25 = vrot.slane %v5131_v43, 1  ;;  %v3122_v21 = vld [vmem:[%s6050_s2 + $0x108] sm:$0xff] }
  0xe6   : > { %3232 = vperm.xlu1 %4633, %v3110_v41   ;;  %3237 = vperm.xlu0 %4632, %v3111_v19   ;;  %v2436_v41 = vrot.slane %v6108_v10, 3 }
  0xe7   : > { %v5626_v31 = vsel %vm941_vm6, %v971_v45, %v973_v25  ;;  %v5630_v2 = vsel %vm941_vm6, %v973_v25, %v5613_v9  ;;  %v6107_v45 = vld [vmem:[#allocation17_spill] sm:$0xff]  ;;  %v6109_v25 = vld [vmem:[#allocation8_spill] sm:$0xff] }
  0xe8   : > { %v2435_v1 = vrot.slane %v6107_v45, 2 }
  0xea   : > { %4040 = vmatmul.mubr.msk.bf16.gmra.mrb[24].mxu1 %vm487_vm2, %v5596_v18  ;;  %3242 = vperm.xlu1 %4633, %v3112_v42   ;;  %v6110_v42 = vld [vmem:[#allocation20_spill] sm:$0xff] }
  0xeb   : > { %4043 = vmatprep.mubr.msk.bf16.mxu1 %vm487_vm2, %v5599_v40  ;;  %3247 = vperm.xlu0 %4632, %v3113_v15   ;;  %v2439_v15 = vrot.slane %v6110_v42, 2 }
  0xec   : > { %4210 = vmatmul.mubr.msk.bf16.gmra.mrb[4].mxu0 %vm487_vm2, %v5265_v58  ;;  %v3114_v58 = vld [vmem:[%s6050_s2 + $0xc8] sm:$0xff] }
  0xed   : > { %4213 = vmatprep.mubr.msk.bf16.mxu0 %vm487_vm2, %v5283_v0  ;;  %v977_v0 = vrot.slane %v5202_v50, 1 }
  0xee   : > { %3252 = vperm.xlu1 %4633, %v3114_v58   ;;  %v6111_v58 = vld [vmem:[#allocation18_spill] sm:$0xff] }
  0xef   : > { %3257 = vperm.xlu0 %4632, %v3115_v48   ;;  %v978_v50 = vsel %vm941_vm6, %v5613_v9, %v977_v0  ;;  %v2440_v48 = vrot.slane %v6111_v58, 3  ;;  %v2437_v0 = vor.u32 %v2436_v41, %v2435_v1 }
  0xf1   : > { %v2438_v35 = vsel %vm2387_vm5, %v2433_v34, %v2437_v0 }
  0xf2   : > { %4044 = vmatmul.mubr.msk.bf16.gmra.mrb[28].mxu1 %vm487_vm2, %v5626_v31  ;;  %3262 = vperm.xlu1 %4633, %v3116_v16   ;;  %v2444_v16 = vrot.slane %v6113_v17, 3 }
  0xf3   : > { %4047 = vmatprep.mubr.msk.bf16.mxu1 %vm487_vm2, %v5630_v2  ;;  %3267 = vperm.xlu0 %4632, %v3117_v37  }
  0xf4   : > { %4214 = vmatmul.mubr.msk.bf16.gmra.mrb[8].mxu0 %vm487_vm2, %v5298_v27  ;;  %v3119_v27 = vld [vmem:[%s6050_s2 + $0xf0] sm:$0xff] }
  0xf5   : > { %4217 = vmatprep.mubr.msk.bf16.mxu0 %vm487_vm2, %v5311_v46  ;;  %v2428_v46 = vrot.slane %v6104_v57, 3 }
  0xf6   : > { %3272 = vperm.xlu1 %4633, %v3118_v5  }
  0xf7   : > { %3277 = vperm.xlu0 %4632, %v3119_v27   ;;  %v2429_v36 = vor.u32 %v2428_v46, %v2427_v62  ;;  %v6115_v27 = vld [vmem:[#allocation19_spill] sm:$0xff] }
  0xf8   : > { %v1554_v62 = vshrl.u32 %v6115_v27, 16  ;;  %v1557_v46 = vshll.u32 %v6115_v27, 16 }
  0xf9   : > { %v2434_v19 = vsel %vm2387_vm5, %v2429_v36, %v2433_v34  ;;  %v2458_v34 = vrot.slane %v2456_v14, 2  ;;  %v1257_v14 = vrot.slane %v6115_v27, 1 }
  0xfa   : > { %4048 = vmatmul.mubr.msk.bf16.gmra.mrb[32].mxu1 %vm487_vm2, %v978_v50  ;;  %3282 = vperm.xlu1 %4633, %v3120_v11   ;;  %v2447_v50 = vrot.slane %v5218_v49, 2  ;;  %v2451_v11 = vrot.slane %v1554_v62, 2 }
  0xfb   : > { %4053 = vmatprep.mubr.msk.bf16.mxu1 %vm487_vm2, %v5425_v6  ;;  %v3121_v6 = vld [vmem:[%s6050_s2 + $0x100] sm:$0xff] }
  0xfc   : > { %4218 = vmatmul.mubr.msk.bf16.gmra.mrb[12].mxu0 %vm487_vm2, %v5327_v39  ;;  %3287 = vperm.xlu0 %4632, %v3121_v6   ;;  %v2430_v39 = vsel %vm2387_vm5, %v2425_v54, %v2429_v36  ;;  %v6114_v54 = vld [vmem:[#allocation23_spill] sm:$0xff]  ;;  %v2452_v6 = vrot.slane %v1557_v46, 3 }
  0xfd   : > { %4221 = vmatprep.mubr.msk.bf16.mxu0 %vm487_vm2, %v2426_v32  ;;  %v2448_v5 = vrot.slane %v6114_v54, 3 }
  0xfe   : > { %3292 = vperm.xlu1 %4633, %v3122_v21  }
  0xff   : > { %v2449_v32 = vor.u32 %v2448_v5, %v2447_v50  ;;  %v4661_v50 = vld [vmem:[%s4849_s7 + $0x30] sm:$0xff]  }
 0x100   : > { %3297 = vperm.xlu0 %4632, %v3123_v28   ;;  %v2465_v28 = vshrl.u32 %v5518_v56, 16  ;;  %v2753_v5 = vrot.slane %v4661_v50, 3 }
 0x102   : > { %4054 = vmatmul.mubr.msk.bf16.vlgmr.msra.gmra.mrb[0].mxu1 %vm487_vm2, %v5428_v22  ;;  %v3124_v22 = vld [vmem:[%s6050_s2 + $0x118] sm:$0xff]  ;;  %v2467_v41 = vrot.slane %v2465_v28, 2 }
 0x103   : > { %4057 = vmatprep.mubr.msk.bf16.mxu1 %vm487_vm2, %v5451_v23  ;;  %4280 = vmatpush3.bf16.msra.mxu1 %v6109_v25  ;;  %v2441_v23 = vor.u32 %v2440_v48, %v2439_v15  ;;  %v4657_v48 = vld [vmem:[%s4849_s7 + $0x10] sm:$0xff]  }
 0x104   : > { %4222 = vmatmul.mubr.msk.bf16.gmra.mrb[16].mxu0 %vm487_vm2, %v2430_v39  ;;  %3302 = vperm.xlu1 %4633, %v3124_v22   ;;  %v2468_v39 = vshll.u32 %v5518_v56, 16  ;;  %v2746_v22 = vrot.slane %v4657_v48, 3 }
 0x105   : > { %4225 = vmatprep.mubr.msk.bf16.mxu0 %vm487_vm2, %v2434_v19  ;;  %v2442_v37 = vsel %vm2387_vm5, %v2437_v0, %v2441_v23  ;;  %v4658_v0 = vld [vmem:[%s4849_s7 + $0x18] sm:$0xff]  }
 0x106   : > { %v2470_v19 = vrot.slane %v2468_v39, 3  ;;  %v2763_v39 = vrot.slane %v5032_v52, 3 }
 0x108   : > { %v2471_v15 = vor.u32 %v2470_v19, %v2467_v41  ;;  %v1537_v19 = vrot.slane %v6107_v45, 1  ;;  %v2767_v45 = vrot.slane %v5072_v33, 3 }
 0x10a   : > { %4058 = vmatmul.mubr.msk.bf16.gmra.mrb[4].mxu1 %vm487_vm2, %v5457_v29  ;;  %v2445_v29 = vor.u32 %v2444_v16, %v2443_v44  ;;  %v4660_v16 = vld [vmem:[%s4849_s7 + $0x28] sm:$0xff]  }
 0x10b   : > { %4061 = vmatprep.mubr.msk.bf16.mxu1 %vm487_vm2, %v5476_v4  ;;  %v2459_v4 = vshll.u32 %v5169_v30, 16 }
 0x10c   : > { %4226 = vmatmul.mubr.msk.bf16.gmra.mrb[20].mxu0 %vm487_vm2, %v2438_v35  ;;  %v2446_v3 = vsel %vm2387_vm5, %v2441_v23, %v2445_v29  ;;  %v2450_v36 = vsel %vm2387_vm5, %v2445_v29, %v2449_v32  ;;  %v4659_v35 = vld [vmem:[%s4849_s7 + $0x20] sm:$0xff]   ;;  %v4662_v29 = vld [vmem:[%s4849_s7 + $0x38] sm:$0xff]  }
 0x10d   : > { %4229 = vmatprep.mubr.msk.bf16.mxu0 %vm487_vm2, %v2442_v37  ;;  %v2461_v21 = vrot.slane %v2459_v4, 3  ;;  %v2749_v44 = vrot.slane %v4659_v35, 3  ;;  %v2751_v37 = vrot.slane %v4660_v16, 3  ;;  %v4663_v4 = vld [vmem:[%s4849_s7 + $0x40] sm:$0xff]   ;;  %v1550_v16 = vrot.slane %v6114_v54, 2 }
 0x10e   : > { %v1566_v54 = vshll.u32 %v5357_v51, 16 }
 0x10f   : > { %v2462_v1 = vor.u32 %v2461_v21, %v2458_v34 }
 0x112   : > { %4062 = vmatmul.mubr.msk.bf16.gmra.mrb[8].mxu1 %vm487_vm2, %v5482_v47  ;;  %v2453_v47 = vor.u32 %v2452_v6, %v2451_v11  ;;  %v4664_v11 = vld [vmem:[%s4849_s7 + $0x48] sm:$0xff]  }
 0x113   : > { %4065 = vmatprep.mubr.msk.bf16.mxu1 %vm487_vm2, %v5504_v60  ;;  %v2759_v6 = vrot.slane %v4664_v11, 3 }
 0x114   : > { %4230 = vmatmul.mubr.msk.bf16.gmra.mrb[24].mxu0 %vm487_vm2, %v2446_v3  ;;  %v2454_v60 = vsel %vm2387_vm5, %v2449_v32, %v2453_v47  ;;  %v2463_v25 = vsel %vm2387_vm5, %v2453_v47, %v2462_v1  ;;  %v2755_v32 = vrot.slane %v4662_v29, 3  ;;  %v2757_v3 = vrot.slane %v4663_v4, 3 }
 0x115   : > { %4233 = vmatprep.mubr.msk.bf16.mxu0 %vm487_vm2, %v2450_v36  ;;  %v1529_v36 = vrot.slane %v6103_v63, 1  ;;  %v1259_v47 = vrot.slane %v5357_v51, 1  ;;  %v2775_v29 = vrot.slane %v5144_v61, 3 }
 0x116   : > { %v2758_v34 = vsel %vm2745_vm7, %v2755_v32, %v2757_v3  ;;  %v2760_v21 = vsel %vm2745_vm7, %v2757_v3, %v2759_v6  ;;  %v2779_v3 = vrot.slane %v5169_v30, 3 }
 0x11a   : > { %4066 = vmatmul.mubr.msk.bf16.gmra.mrb[12].mxu1 %vm487_vm2, %v5510_v59  ;;  %v2747_v59 = vrot.slane %v4658_v0, 3  ;;  %v1542_v0 = vrot.slane %v6111_v58, 2 }
 0x11b   : > { %4069 = vmatprep.mubr.msk.bf16.mxu1 %vm487_vm2, %v5536_v20  ;;  %v2472_v20 = vsel %vm2387_vm5, %v2462_v1, %v2471_v15  ;;  %v1534_v1 = vrot.slane %v6106_v24, 2 }
 0x11c   : > { %4234 = vmatmul.mubr.msk.bf16.gmra.mrb[28].mxu0 %vm487_vm2, %v2454_v60  ;;  %v2748_v23 = vsel %vm2745_vm7, %v2746_v22, %v2747_v59  ;;  %v6116_v60 = vld [vmem:[#allocation11_spill] sm:$0xff] }
 0x11d   : > { %4237 = vmatprep.mubr.msk.bf16.mxu0 %vm487_vm2, %v2463_v25  ;;  %v1538_v25 = vrot.slane %v6108_v10, 2  ;;  %v1541_v10 = vrot.slane %v6110_v42, 1  ;;  %v2769_v42 = vrot.slane %v5096_v55, 3 }
 0x11f   : > { %v1539_v22 = vor.u32 %v1538_v25, %v1537_v19  ;;  %v2770_v55 = vsel %vm2745_vm7, %v2767_v45, %v2769_v42 }
 0x122   : > { %4070 = vmatmul.mubr.msk.bf16.gmra.mrb[16].mxu1 %vm487_vm2, %v5542_v8  ;;  %v2750_v8 = vsel %vm2745_vm7, %v2747_v59, %v2749_v44 }
 0x123   : > { %4073 = vmatprep.mubr.msk.bf16.mxu1 %vm487_vm2, %v5566_v38  ;;  %v2752_v38 = vsel %vm2745_vm7, %v2749_v44, %v2751_v37  ;;  %v1543_v44 = vor.u32 %v1542_v0, %v1541_v10 }
 0x124   : > { %4238 = vmatmul.mubr.msk.bf16.gmra.mrb[32].mxu0 %vm487_vm2, %v2472_v20  ;;  %v1545_v20 = vrot.slane %v6112_v13, 1  ;;  %v2771_v13 = vrot.slane %v5104_v7, 3 }
 0x125   : > { %4243 = vmatprep.mubr.msk.bf16.mxu0 %vm487_vm2, %v2748_v23  ;;  %v1546_v23 = vrot.slane %v6113_v17, 2  ;;  %v1544_v58 = vsel %vm1485_vm3, %v1539_v22, %v1543_v44  ;;  %v1549_v17 = vrot.slane %v5218_v49, 1  ;;  %v1563_v49 = vshrl.u32 %v5357_v51, 16 }
 0x126   : > { %v2772_v7 = vsel %vm2745_vm7, %v2769_v42, %v2771_v13 }
 0x127   : > { %v1547_v33 = vor.u32 %v1546_v23, %v1545_v20  ;;  %v1551_v50 = vor.u32 %v1550_v16, %v1549_v17 }
 0x12a   : > { %4074 = vmatmul.mubr.msk.bf16.gmra.mrb[20].mxu1 %vm487_vm2, %v5572_v12  ;;  %v2754_v12 = vsel %vm2745_vm7, %v2751_v37, %v2753_v5  ;;  %v1548_v37 = vsel %vm1485_vm3, %v1543_v44, %v1547_v33 }
 0x12b   : > { %4077 = vmatprep.mubr.msk.bf16.mxu1 %vm487_vm2, %v5596_v18  ;;  %v2756_v18 = vsel %vm2745_vm7, %v2753_v5, %v2755_v32  ;;  %v1565_v32 = vrot.slane %v1563_v49, 1 }
 0x12c   : > { %4244 = vmatmul.mubr.msk.bf16.vlgmr.msra.gmra.mrb[0].mxu0 %vm487_vm2, %v2750_v8  ;;  %v1556_v8 = vrot.slane %v1554_v62, 1  ;;  %v2773_v62 = vrot.slane %v5131_v43, 3  ;;  %v2777_v43 = vrot.slane %v6115_v27, 3 }
 0x12d   : > { %4247 = vmatprep.mubr.msk.bf16.mxu0 %vm487_vm2, %v2752_v38  ;;  %v1559_v38 = vrot.slane %v1557_v46, 2  ;;  %v1552_v46 = vsel %vm1485_vm3, %v1547_v33, %v1551_v50 }
 0x12e   : > { %v2776_v51 = vsel %vm2745_vm7, %v2773_v62, %v2775_v29  ;;  %v2778_v11 = vsel %vm2745_vm7, %v2775_v29, %v2777_v43 }
 0x12f   : > { %v1560_v5 = vor.u32 %v1559_v38, %v1556_v8 }
 0x132   : > { %4078 = vmatmul.mubr.msk.bf16.gmra.mrb[24].mxu1 %vm487_vm2, %v5599_v40  ;;  %v1258_v40 = vsel %vm941_vm6, %v5613_v9, %v1257_v14  ;;  %v4665_v9 = vld [vmem:[%s4849_s7 + $0x50] sm:$0xff]   ;;  %s4581_s7 = smul.u32 4608, %s4812_s19 }
 0x133   : > { %4081 = vmatprep.mubr.msk.bf16.mxu1 %vm487_vm2, %v5626_v31  ;;  %v1530_v31 = vrot.slane %v6104_v57, 2  ;;  %v2761_v63 = vrot.slane %v4665_v9, 3  ;;  %v1260_v57 = vsel %vm941_vm6, %v1257_v14, %v1259_v47  ;;  %v2774_v14 = vsel %vm2745_vm7, %v2771_v13, %v2773_v62 }
 0x134   : > { %4248 = vmatmul.mubr.msk.bf16.gmra.mrb[4].mxu0 %vm487_vm2, %v2754_v12  ;;  %v1568_v12 = vrot.slane %v1566_v54, 2  ;;  %s5976_s28 = scalar_lea.hbm %s6051_s3, %s4581_s7 }
 0x135   : > { %4251 = vmatprep.mubr.msk.bf16.mxu0 %vm487_vm2, %v2756_v18  ;;  %v1531_v28 = vor.u32 %v1530_v31, %v1529_v36  ;;  %v2762_v15 = vsel %vm2745_vm7, %v2759_v6, %v2761_v63  ;;  %v2764_v48 = vsel %vm2745_vm7, %v2761_v63, %v2763_v39  ;;  %v1561_v18 = vsel %vm1485_vm3, %v1551_v50, %v1560_v5 }
 0x136   : > { %v1569_v4 = vor.u32 %v1568_v12, %v1565_v32  ;;  %v2780_v6 = vsel %vm2745_vm7, %v2777_v43, %v2779_v3 }
 0x137   : > { %v1532_v41 = vsel %vm1485_vm3, %v6116_v60, %v1531_v28 }
 0x138   : > { %v1570_v61 = vsel %vm1485_vm3, %v1560_v5, %v1569_v4 }
 0x13a   : > { %4082 = vmatmul.mubr.msk.bf16.gmra.mrb[28].mxu1 %vm487_vm2, %v5630_v2  ;;  %v1533_v2 = vrot.slane %v6105_v53, 1  ;;  %v2765_v53 = vrot.slane %v5064_v26, 3 }
 0x13b   : > { %4085 = vmatprep.mubr.msk.bf16.mxu1 %vm487_vm2, %v1258_v40  ;;  %v2781_v40 = vrot.slane %v5518_v56, 3 }
 0x13c   : > { %4252 = vmatmul.mubr.msk.bf16.gmra.mrb[8].mxu0 %vm487_vm2, %v2758_v34  ;;  %v1535_v52 = vor.u32 %v1534_v1, %v1533_v2  ;;  %v2766_v35 = vsel %vm2745_vm7, %v2763_v39, %v2765_v53  ;;  %v2768_v26 = vsel %vm2745_vm7, %v2765_v53, %v2767_v45 }
 0x13d   : > { %4255 = vmatprep.mubr.msk.bf16.mxu0 %vm487_vm2, %v2760_v21  ;;  %v2782_v36 = vsel %vm2745_vm7, %v2779_v3, %v2781_v40  ;;  %v3128_v21 = vpop.permute.xlu0 %3127 }
 0x13e   : > { %v1536_v24 = vsel %vm1485_vm3, %v1531_v28, %v1535_v52  ;;  %v1540_v59 = vsel %vm1485_vm3, %v1535_v52, %v1539_v22 }
 0x141   : > { %v3133_v39 = vpop.permute.xlu0 %3132 }
 0x142   : > { %4086 = vmatmul.mubr.msk.bf16.gmra.mrb[32].mxu1 %vm487_vm2, %v1260_v57  ;;  %v3138_v57 = vpop.permute.xlu1 %3137 }
 0x143   : > { %4111 = vmatprep.mubr.msk.bf16.mxu1 %vm487_vm2, %v1532_v41 }
 0x144   : > { %4256 = vmatmul.mubr.msk.bf16.gmra.mrb[12].mxu0 %vm487_vm2, %v2762_v15 }
 0x145   : > { %4259 = vmatprep.mubr.msk.bf16.mxu0 %vm487_vm2, %v2764_v48  ;;  %v3148_v19 = vpop.permute.xlu0 %3147 }
 0x146   : > { %v3143_v56 = vpop.permute.xlu1 %3142 }
 0x149   : > { %v3158_v52 = vpop.permute.xlu0 %3157 }
 0x14a   : > { %4112 = vmatmul.mubr.msk.bf16.vlgmr.msra.gmra.mrb[20].mxu1 %vm487_vm2, %v1536_v24  ;;  %v3153_v25 = vpop.permute.xlu1 %3152 }
 0x14b   : > { %4115 = vmatprep.mubr.msk.bf16.mxu1 %vm487_vm2, %v1540_v59 }
 0x14c   : > { %4260 = vmatmul.mubr.msk.bf16.gmra.mrb[16].mxu0 %vm487_vm2, %v2766_v35 }
 0x14d   : > { %4263 = vmatprep.mubr.msk.bf16.mxu0 %vm487_vm2, %v2768_v26  ;;  %v5872_v45 = vpop.permute.xlu0 %3167 }
 0x14e   : > { %v3163_v24 = vpop.permute.xlu1 %3162 }
 0x151   : > { %v5884_v35 = vpop.permute.xlu0 %3177 }
 0x152   : > { %4116 = vmatmul.mubr.msk.bf16.gmra.mrb[24].mxu1 %vm487_vm2, %v1544_v58  ;;  %v5882_v23 = vpop.permute.xlu1 %3172 }
 0x153   : > { %4119 = vmatprep.mubr.msk.bf16.mxu1 %vm487_vm2, %v1548_v37 }
 0x154   : > { %4264 = vmatmul.mubr.msk.bf16.gmra.mrb[20].mxu0 %vm487_vm2, %v2770_v55 }
 0x155   : > { %4267 = vmatprep.mubr.msk.bf16.mxu0 %vm487_vm2, %v2772_v7  ;;  %v5888_v33 = vpop.permute.xlu0 %3187 }
 0x156   : > { %v5886_v26 = vpop.permute.xlu1 %3182 }
 0x159   : > { %v5896_v49 = vpop.permute.xlu0 %3197 }
 0x15a   : > { %4120 = vmatmul.mubr.msk.bf16.gmra.mrb[28].mxu1 %vm487_vm2, %v1552_v46  ;;  %v5892_v55 = vpop.permute.xlu1 %3192 }
 0x15b   : > { %4123 = vmatprep.mubr.msk.bf16.mxu1 %vm487_vm2, %v1561_v18 }
 0x15c   : > { %4268 = vmatmul.mubr.msk.bf16.gmra.mrb[24].mxu0 %vm487_vm2, %v2774_v14 }
 0x15d   : > { %4271 = vmatprep.mubr.msk.bf16.mxu0 %vm487_vm2, %v2776_v51 }
 0x162   : > { %4124 = vmatmul.mubr.msk.bf16.gmra.mrb[32].mxu1 %vm487_vm2, %v1570_v61  ;;  %v5898_v61 = vpop.permute.xlu1 %3202 }
 0x164   : > { %4272 = vmatmul.mubr.msk.bf16.gmra.mrb[28].mxu0 %vm487_vm2, %v2778_v11 }
 0x165   : > { %4275 = vmatprep.mubr.msk.bf16.mxu0 %vm487_vm2, %v2780_v6 }
 0x16c   : > { %4276 = vmatmul.mubr.msk.bf16.gmra.mrb[32].mxu0 %vm487_vm2, %v2782_v36 }
 0x1d5   : > { %v4055_v27 = vpop.f32.mrb[0].mxu1 }
 0x1d6   : > { %v1304_v31 = vpop.f32.mrb[1].mxu1 }
 0x1d7   : > { %v4056_v34 = vpop.f32.mrb[2].mxu1 }
 0x1d8   : > { %v1307_v30 = vpop.f32.mrb[3].mxu1 }
 0x1dd   : > { %v4059_v47 = vpop.f32.mrb[4].mxu1 }
 0x1de   : > { %v1320_v28 = vpop.f32.mrb[5].mxu1 }
 0x1df   : > { %v4060_v9 = vpop.f32.mrb[6].mxu1 }
 0x1e0   : > { %v5854_v63 = vpop.f32.mrb[7].mxu1 }
 0x1e5   : > { %v5856_v2 = vpop.f32.mrb[8].mxu1 }
 0x1e6   : > { %v5858_v1 = vpop.f32.mrb[9].mxu1 }
 0x1e7   : > { %v5860_v60 = vpop.f32.mrb[10].mxu1 }
 0x1e8   : > { %v5862_v41 = vpop.f32.mrb[11].mxu1 }
 0x1ed   : > { %v5864_v15 = vpop.f32.mrb[12].mxu1 }
 0x1ee   : > { %v5866_v48 = vpop.f32.mrb[13].mxu1 }
 0x1ef   : > { %v5868_v22 = vpop.f32.mrb[14].mxu1 }
 0x1f0   : > { %v5870_v53 = vpop.f32.mrb[15].mxu1 }
 0x1f5   : > { %v5874_v10 = vpop.f32.mrb[16].mxu1 }
 0x1f6   : > { %v5876_v0 = vpop.f32.mrb[17].mxu1 }
 0x1f7   : > { %v5878_v59 = vpop.f32.mrb[18].mxu1 }
 0x1f8   : > { %v5880_v20 = vpop.f32.mrb[19].mxu1 }
 0x1ff   : > { %v4245_v44 = vpop.f32.mrb[0].mxu0 }
 0x200   : > { %v4281_v42 = vadd.f32 %v4245_v44, %v4055_v27  ;;  %v2874_v58 = vpop.f32.mrb[1].mxu0 }
 0x201   : > { %v4282_v13 = vadd.f32 %v2874_v58, %v1304_v31  ;;  %v4246_v17 = vpop.f32.mrb[2].mxu0 }
 0x202   : > { %3055 = vst [vmem:[%s4851_s8 + $0x10] sm:$0xff] %v4281_v42  ;;  %v4283_v16 = vadd.f32 %v4246_v17, %v4056_v34  ;;  %v2877_v37 = vpop.f32.mrb[3].mxu0  ;;  %v3307_v7 = vmul.f32 %v4281_v42, %v3138_v57  ;;  %v5903_v34 = vpop.permute.xlu0 %3207 }
 0x203   : > { %3053 = vst [vmem:[%s4851_s8] sm:$0xff] %v4282_v13  ;;  %v3305_v8 = vmul.f32 %v4282_v13, %v3128_v21  ;;  %v4284_v38 = vadd.f32 %v2877_v37, %v1307_v30 }
 0x204   : > { %3056 = vst [vmem:[%s4851_s8 + $0x18] sm:$0xff] %v4283_v16  ;;  %v3308_v54 = vmul.f32 %v4283_v16, %v3143_v56  ;;  %v3384_v18 = vmul.f32 %v4281_v42, %v3307_v7 }
 0x205   : > { %3054 = vst [vmem:[%s4851_s8 + $0x8] sm:$0xff] %v4284_v38  ;;  %v3306_v50 = vmul.f32 %v4284_v38, %v3133_v39  ;;  %v3382_v5 = vmul.f32 %v4282_v13, %v3305_v8 }
 0x206   : > { %v3385_v3 = vmul.f32 %v4283_v16, %v3308_v54 }
 0x207   : > { %v3341_v62 = vadd.f32 %v3306_v50, %v3305_v8  ;;  %v3383_v46 = vmul.f32 %v4284_v38, %v3306_v50  ;;  %v4249_v29 = vpop.f32.mrb[4].mxu0 }
 0x208   : > { %v4285_v32 = vadd.f32 %v4249_v29, %v4059_v47  ;;  %v2890_v12 = vpop.f32.mrb[5].mxu0 }
 0x209   : > { %v3342_v14 = vadd.f32 %v3341_v62, %v3307_v7  ;;  %v3418_v51 = vadd.f32 %v3383_v46, %v3382_v5  ;;  %v4286_v4 = vadd.f32 %v2890_v12, %v1320_v28  ;;  %v4250_v43 = vpop.f32.mrb[6].mxu0 }
 0x20a   : > { %3059 = vst [vmem:[%s4851_s8 + $0x30] sm:$0xff] %v4285_v32  ;;  %v4287_v11 = vadd.f32 %v4250_v43, %v4060_v9  ;;  %v2893_v6 = vpop.f32.mrb[7].mxu0  ;;  %v3311_v30 = vmul.f32 %v4285_v32, %v3158_v52 }
 0x20b   : > { %v3419_v40 = vadd.f32 %v3418_v51, %v3384_v18  ;;  %3057 = vst [vmem:[%s4851_s8 + $0x20] sm:$0xff] %v4286_v4  ;;  %v3309_v36 = vmul.f32 %v4286_v4, %v3148_v19  ;;  %v3343_v27 = vadd.f32 %v3342_v14, %v3308_v54  ;;  %v4288_v31 = vadd.f32 %v2893_v6, %v5854_v63  ;;  %v5907_v19 = vpop.permute.xlu1 %3212 }
 0x20c   : > { %3060 = vst [vmem:[%s4851_s8 + $0x38] sm:$0xff] %v4287_v11  ;;  %v3312_v39 = vmul.f32 %v4287_v11, %v3163_v24  ;;  %v3388_v13 = vmul.f32 %v4285_v32, %v3311_v30 }
 0x20d   : > { %v3344_v21 = vadd.f32 %v3343_v27, %v3309_v36  ;;  %v3386_v47 = vmul.f32 %v4286_v4, %v3309_v36  ;;  %v3420_v28 = vadd.f32 %v3419_v40, %v3385_v3  ;;  %3058 = vst [vmem:[%s4851_s8 + $0x28] sm:$0xff] %v4288_v31  ;;  %v3310_v57 = vmul.f32 %v4288_v31, %v3153_v25  ;;  %v5911_v25 = vpop.permute.xlu0 %3217 }
 0x20e   : > { %v3389_v24 = vmul.f32 %v4287_v11, %v3312_v39 }
 0x20f   : > { %v3421_v56 = vadd.f32 %v3420_v28, %v3386_v47  ;;  %v3345_v9 = vadd.f32 %v3344_v21, %v3310_v57  ;;  %v3387_v44 = vmul.f32 %v4288_v31, %v3310_v57  ;;  %v4253_v42 = vpop.f32.mrb[8].mxu0  ;;  %v5922_v32 = vpop.permute.xlu1 %3222 }
 0x210   : > { %v4289_v63 = vadd.f32 %v4253_v42, %v5856_v2  ;;  %v2906_v58 = vpop.f32.mrb[9].mxu0 }
 0x211   : > { %v3346_v52 = vadd.f32 %v3345_v9, %v3311_v30  ;;  %v3422_v17 = vadd.f32 %v3421_v56, %v3387_v44  ;;  %v4290_v16 = vadd.f32 %v2906_v58, %v5858_v1  ;;  %v4254_v37 = vpop.f32.mrb[10].mxu0 }
 0x212   : > { %3063 = vst [vmem:[%s4851_s8 + $0x50] sm:$0xff] %v4289_v63  ;;  %v4291_v8 = vadd.f32 %v4254_v37, %v5860_v60  ;;  %v2909_v38 = vpop.f32.mrb[11].mxu0  ;;  %v3315_v5 = vmul.f32 %v4289_v63, %v5884_v35 }
 0x213   : > { %v3423_v7 = vadd.f32 %v3422_v17, %v3388_v13  ;;  %3061 = vst [vmem:[%s4851_s8 + $0x40] sm:$0xff] %v4290_v16  ;;  %v3313_v2 = vmul.f32 %v4290_v16, %v5872_v45  ;;  %v3347_v50 = vadd.f32 %v3346_v52, %v3312_v39  ;;  %v4292_v54 = vadd.f32 %v2909_v38, %v5862_v41  ;;  %v5925_v41 = vpop.permute.xlu0 %3227  ;;  %v5934_v30 = vpop.permute.xlu1 %3232 }
 0x214   : > { %3064 = vst [vmem:[%s4851_s8 + $0x58] sm:$0xff] %v4291_v8  ;;  %v3316_v60 = vmul.f32 %v4291_v8, %v5886_v26  ;;  %v3392_v4 = vmul.f32 %v4289_v63, %v3315_v5 }
 0x215   : > { %v3348_v1 = vadd.f32 %v3347_v50, %v3313_v2  ;;  %v3390_v62 = vmul.f32 %v4290_v16, %v3313_v2  ;;  %v3424_v46 = vadd.f32 %v3423_v7, %v3389_v24  ;;  %3062 = vst [vmem:[%s4851_s8 + $0x48] sm:$0xff] %v4292_v54  ;;  %v3314_v29 = vmul.f32 %v4292_v54, %v5882_v23 }
 0x216   : > { %v3393_v6 = vmul.f32 %v4291_v8, %v3316_v60 }
 0x217   : > { %v3425_v12 = vadd.f32 %v3424_v46, %v3390_v62  ;;  %v3349_v18 = vadd.f32 %v3348_v1, %v3314_v29  ;;  %v3391_v45 = vmul.f32 %v4292_v54, %v3314_v29  ;;  %v4257_v14 = vpop.f32.mrb[12].mxu0  ;;  %v3238_v56 = vpop.permute.xlu0 %3237 }
 0x218   : > { %v4293_v35 = vadd.f32 %v4257_v14, %v5864_v15  ;;  %v2922_v51 = vpop.f32.mrb[13].mxu0  ;;  %v3243_v24 = vpop.permute.xlu1 %3242 }
 0x219   : > { %v3350_v43 = vadd.f32 %v3349_v18, %v3315_v5  ;;  %v3426_v3 = vadd.f32 %v3425_v12, %v3391_v45  ;;  %v4294_v23 = vadd.f32 %v2922_v51, %v5866_v48  ;;  %v4258_v11 = vpop.f32.mrb[14].mxu0 }
 0x21a   : > { %3067 = vst [vmem:[%s4851_s8 + $0x70] sm:$0xff] %v4293_v35  ;;  %v4295_v26 = vadd.f32 %v4258_v11, %v5868_v22  ;;  %v2925_v40 = vpop.f32.mrb[15].mxu0  ;;  %v3319_v21 = vmul.f32 %v4293_v35, %v5896_v49 }
 0x21b   : > { %v3427_v36 = vadd.f32 %v3426_v3, %v3392_v4  ;;  %3065 = vst [vmem:[%s4851_s8 + $0x60] sm:$0xff] %v4294_v23  ;;  %v3317_v27 = vmul.f32 %v4294_v23, %v5888_v33  ;;  %v3351_v31 = vadd.f32 %v3350_v43, %v3316_v60  ;;  %v4296_v15 = vadd.f32 %v2925_v40, %v5870_v53  ;;  %v5948_v54 = vpop.permute.xlu0 %3247 }
 0x21c   : > { %3068 = vst [vmem:[%s4851_s8 + $0x78] sm:$0xff] %v4295_v26  ;;  %v3320_v9 = vmul.f32 %v4295_v26, %v5898_v61  ;;  %v3396_v52 = vmul.f32 %v4293_v35, %v3319_v21 }
 0x21d   : > { %v4113_v48 = vpop.f32.mrb[20].mxu1  ;;  %v3352_v47 = vadd.f32 %v3351_v31, %v3317_v27  ;;  %v3394_v28 = vmul.f32 %v4294_v23, %v3317_v27  ;;  %v3428_v57 = vadd.f32 %v3427_v36, %v3393_v6  ;;  %3066 = vst [vmem:[%s4851_s8 + $0x68] sm:$0xff] %v4296_v15  ;;  %v3318_v22 = vmul.f32 %v4296_v15, %v5892_v55 }
 0x21e   : > { %v1742_v39 = vpop.f32.mrb[21].mxu1  ;;  %v3397_v61 = vmul.f32 %v4295_v26, %v3320_v9 }
 0x21f   : > { %v4114_v33 = vpop.f32.mrb[22].mxu1  ;;  %v3429_v44 = vadd.f32 %v3428_v57, %v3394_v28  ;;  %v3353_v53 = vadd.f32 %v3352_v47, %v3318_v22  ;;  %v3395_v42 = vmul.f32 %v4296_v15, %v3318_v22  ;;  %v4261_v63 = vpop.f32.mrb[16].mxu0 }
 0x220   : > { %v1745_v49 = vpop.f32.mrb[23].mxu1  ;;  %v4297_v58 = vadd.f32 %v4261_v63, %v5874_v10  ;;  %v2938_v13 = vpop.f32.mrb[17].mxu0 }
 0x221   : > { %v3354_v17 = vadd.f32 %v3353_v53, %v3319_v21  ;;  %v3430_v16 = vadd.f32 %v3429_v44, %v3395_v42  ;;  %v4298_v55 = vadd.f32 %v2938_v13, %v5876_v0  ;;  %v4262_v37 = vpop.f32.mrb[18].mxu0  ;;  %v3258_v11 = vpop.permute.xlu0 %3257 }
 0x222   : > { %3071 = vst [vmem:[%s4851_s8 + $0x90] sm:$0xff] %v4297_v58  ;;  %v4299_v8 = vadd.f32 %v4262_v37, %v5878_v59  ;;  %v2941_v38 = vpop.f32.mrb[19].mxu0  ;;  %v3323_v5 = vmul.f32 %v4297_v58, %v5911_v25  ;;  %v3253_v25 = vpop.permute.xlu1 %3252 }
 0x223   : > { %v3431_v7 = vadd.f32 %v3430_v16, %v3396_v52  ;;  %3069 = vst [vmem:[%s4851_s8 + $0x80] sm:$0xff] %v4298_v55  ;;  %v3321_v2 = vmul.f32 %v4298_v55, %v5903_v34  ;;  %v3355_v10 = vadd.f32 %v3354_v17, %v3320_v9  ;;  %v4300_v50 = vadd.f32 %v2941_v38, %v5880_v20 }
 0x224   : > { %3072 = vst [vmem:[%s4851_s8 + $0x98] sm:$0xff] %v4299_v8  ;;  %v3324_v60 = vmul.f32 %v4299_v8, %v5922_v32  ;;  %v3400_v4 = vmul.f32 %v4297_v58, %v3323_v5 }
 0x225   : > { %v4117_v0 = vpop.f32.mrb[24].mxu1  ;;  %v3356_v1 = vadd.f32 %v3355_v10, %v3321_v2  ;;  %v3398_v62 = vmul.f32 %v4298_v55, %v3321_v2  ;;  %v3432_v46 = vadd.f32 %v3431_v7, %v3397_v61  ;;  %3070 = vst [vmem:[%s4851_s8 + $0x88] sm:$0xff] %v4300_v50  ;;  %v3322_v59 = vmul.f32 %v4300_v50, %v5907_v19 }
 0x226   : > { %v1758_v29 = vpop.f32.mrb[25].mxu1  ;;  %v3401_v32 = vmul.f32 %v4299_v8, %v3324_v60 }
 0x227   : > { %v4118_v12 = vpop.f32.mrb[26].mxu1  ;;  %v3433_v34 = vadd.f32 %v3432_v46, %v3398_v62  ;;  %v3357_v18 = vadd.f32 %v3356_v1, %v3322_v59  ;;  %v3399_v20 = vmul.f32 %v4300_v50, %v3322_v59  ;;  %v4265_v45 = vpop.f32.mrb[20].mxu0 }
 0x228   : > { %v1761_v14 = vpop.f32.mrb[27].mxu1  ;;  %v4301_v35 = vadd.f32 %v4265_v45, %v4113_v48  ;;  %v2954_v51 = vpop.f32.mrb[21].mxu0 }
 0x229   : > { %v3358_v43 = vadd.f32 %v3357_v18, %v3323_v5  ;;  %v3434_v3 = vadd.f32 %v3433_v34, %v3399_v20  ;;  %v4302_v23 = vadd.f32 %v2954_v51, %v1742_v39  ;;  %v4266_v19 = vpop.f32.mrb[22].mxu0  ;;  %v3263_v39 = vpop.permute.xlu1 %3262 }
 0x22a   : > { %3075 = vst [vmem:[%s4851_s8 + $0xb0] sm:$0xff] %v4301_v35  ;;  %v4303_v6 = vadd.f32 %v4266_v19, %v4114_v33  ;;  %v2957_v26 = vpop.f32.mrb[23].mxu0  ;;  %v3327_v15 = vmul.f32 %v4301_v35, %v3238_v56  ;;  %v3268_v56 = vpop.permute.xlu0 %3267 }
 0x22b   : > { %v3435_v40 = vadd.f32 %v3434_v3, %v3400_v4  ;;  %3073 = vst [vmem:[%s4851_s8 + $0xa0] sm:$0xff] %v4302_v23  ;;  %v3325_v36 = vmul.f32 %v4302_v23, %v5925_v41  ;;  %v3359_v27 = vadd.f32 %v3358_v43, %v3324_v60  ;;  %v4304_v31 = vadd.f32 %v2957_v26, %v1745_v49 }
 0x22c   : > { %3076 = vst [vmem:[%s4851_s8 + $0xb8] sm:$0xff] %v4303_v6  ;;  %v3328_v9 = vmul.f32 %v4303_v6, %v3243_v24  ;;  %v3404_v13 = vmul.f32 %v4301_v35, %v3327_v15 }
 0x22d   : > { %v4121_v21 = vpop.f32.mrb[28].mxu1  ;;  %v3360_v48 = vadd.f32 %v3359_v27, %v3325_v36  ;;  %v3402_v47 = vmul.f32 %v4302_v23, %v3325_v36  ;;  %v3436_v28 = vadd.f32 %v3435_v40, %v3401_v32  ;;  %3074 = vst [vmem:[%s4851_s8 + $0xa8] sm:$0xff] %v4304_v31  ;;  %v3326_v57 = vmul.f32 %v4304_v31, %v5934_v30  ;;  %v3273_v2 = vpop.permute.xlu1 %3272 }
 0x22e   : > { %v1774_v22 = vpop.f32.mrb[29].mxu1  ;;  %v3405_v55 = vmul.f32 %v4303_v6, %v3328_v9  ;;  %v3278_v59 = vpop.permute.xlu0 %3277 }
 0x22f   : > { %v4122_v33 = vpop.f32.mrb[30].mxu1  ;;  %v3437_v44 = vadd.f32 %v3436_v28, %v3402_v47  ;;  %v3361_v53 = vadd.f32 %v3360_v48, %v3326_v57  ;;  %v3403_v42 = vmul.f32 %v4304_v31, %v3326_v57  ;;  %v4269_v41 = vpop.f32.mrb[24].mxu0 }
 0x230   : > { %v1777_v63 = vpop.f32.mrb[31].mxu1  ;;  %v4305_v49 = vadd.f32 %v4269_v41, %v4117_v0  ;;  %v2970_v58 = vpop.f32.mrb[25].mxu0 }
 0x231   : > { %v3362_v52 = vadd.f32 %v3361_v53, %v3327_v15  ;;  %v3438_v17 = vadd.f32 %v3437_v44, %v3403_v42  ;;  %v4306_v16 = vadd.f32 %v2970_v58, %v1758_v29  ;;  %v4270_v30 = vpop.f32.mrb[26].mxu0 }
 0x232   : > { %3079 = vst [vmem:[%s4851_s8 + $0xd0] sm:$0xff] %v4305_v49  ;;  %v4307_v37 = vadd.f32 %v4270_v30, %v4118_v12  ;;  %v2973_v24 = vpop.f32.mrb[27].mxu0  ;;  %v3331_v10 = vmul.f32 %v4305_v49, %v3258_v11  ;;  %v3288_v27 = vpop.permute.xlu0 %3287 }
 0x233   : > { %v3439_v61 = vadd.f32 %v3438_v17, %v3404_v13  ;;  %3077 = vst [vmem:[%s4851_s8 + $0xc0] sm:$0xff] %v4306_v16  ;;  %v3329_v8 = vmul.f32 %v4306_v16, %v5948_v54  ;;  %v3363_v38 = vadd.f32 %v3362_v52, %v3328_v9  ;;  %v4308_v7 = vadd.f32 %v2973_v24, %v1761_v14 }
 0x234   : > { %3080 = vst [vmem:[%s4851_s8 + $0xd8] sm:$0xff] %v4307_v37  ;;  %v3332_v29 = vmul.f32 %v4307_v37, %v3263_v39  ;;  %v3408_v35 = vmul.f32 %v4305_v49, %v3331_v10 }
 0x235   : > { %v4125_v50 = vpop.f32.mrb[32].mxu1  ;;  %v3364_v5 = vadd.f32 %v3363_v38, %v3329_v8  ;;  %v3406_v0 = vmul.f32 %v4306_v16, %v3329_v8  ;;  %v3440_v1 = vadd.f32 %v3439_v61, %v3405_v55  ;;  %3078 = vst [vmem:[%s4851_s8 + $0xc8] sm:$0xff] %v4308_v7  ;;  %v3330_v62 = vmul.f32 %v4308_v7, %v3253_v25  ;;  %v3283_v25 = vpop.permute.xlu1 %3282 }
 0x236   : > { %v1790_v46 = vpop.f32.mrb[33].mxu1  ;;  %v3409_v23 = vmul.f32 %v4307_v37, %v3332_v29  ;;  %v3298_v52 = vpop.permute.xlu0 %3297 }
 0x237   : > { %v4126_v60 = vpop.f32.mrb[34].mxu1  ;;  %v3441_v12 = vadd.f32 %v3440_v1, %v3406_v0  ;;  %v3365_v34 = vadd.f32 %v3364_v5, %v3330_v62  ;;  %v3407_v18 = vmul.f32 %v4308_v7, %v3330_v62  ;;  %v4273_v54 = vpop.f32.mrb[28].mxu0 }
 0x238   : > { %v1793_v20 = vpop.f32.mrb[35].mxu1  ;;  %v4309_v45 = vadd.f32 %v4273_v54, %v4121_v21  ;;  %v2986_v14 = vpop.f32.mrb[29].mxu0 }
 0x239   : > { %v3366_v51 = vadd.f32 %v3365_v34, %v3331_v10  ;;  %v3442_v4 = vadd.f32 %v3441_v12, %v3407_v18  ;;  %v4310_v43 = vadd.f32 %v2986_v14, %v1774_v22  ;;  %v4274_v3 = vpop.f32.mrb[30].mxu0  ;;  %v3293_v9 = vpop.permute.xlu1 %3292 }
 0x23a   : > { %3083 = vst [vmem:[%s4851_s8 + $0xf0] sm:$0xff] %v4309_v45  ;;  %v4311_v19 = vadd.f32 %v4274_v3, %v4122_v33  ;;  %v2989_v11 = vpop.f32.mrb[31].mxu0  ;;  %v3335_v36 = vmul.f32 %v4309_v45, %v3278_v59 }
 0x23b   : > { %v3443_v32 = vadd.f32 %v3442_v4, %v3408_v35  ;;  %3081 = vst [vmem:[%s4851_s8 + $0xe0] sm:$0xff] %v4310_v43  ;;  %v3333_v6 = vmul.f32 %v4310_v43, %v3268_v56  ;;  %v3367_v26 = vadd.f32 %v3366_v51, %v3332_v29  ;;  %v4312_v40 = vadd.f32 %v2989_v11, %v1777_v63 }
 0x23c   : > { %3084 = vst [vmem:[%s4851_s8 + $0xf8] sm:$0xff] %v4311_v19  ;;  %v3336_v47 = vmul.f32 %v4311_v19, %v3283_v25  ;;  %v3412_v53 = vmul.f32 %v4309_v45, %v3335_v36 }
 0x23d   : > { %v3368_v31 = vadd.f32 %v3367_v26, %v3333_v6  ;;  %v3410_v15 = vmul.f32 %v4310_v43, %v3333_v6  ;;  %v3444_v21 = vadd.f32 %v3443_v32, %v3409_v23  ;;  %3082 = vst [vmem:[%s4851_s8 + $0xe8] sm:$0xff] %v4312_v40  ;;  %v3334_v48 = vmul.f32 %v4312_v40, %v3273_v2  ;;  %v3303_v7 = vpop.permute.xlu1 %3302 }
 0x23e   : > { %v3413_v49 = vmul.f32 %v4311_v19, %v3336_v47 }
 0x23f   : > { %v3445_v28 = vadd.f32 %v3444_v21, %v3410_v15  ;;  %v3369_v57 = vadd.f32 %v3368_v31, %v3334_v48  ;;  %v3411_v22 = vmul.f32 %v4312_v40, %v3334_v48  ;;  %v4277_v39 = vpop.f32.mrb[32].mxu0 }
 0x240   : > { %v4313_v33 = vadd.f32 %v4277_v39, %v4125_v50  ;;  %v3002_v44 = vpop.f32.mrb[33].mxu0 }
 0x241   : > { %v3370_v42 = vadd.f32 %v3369_v57, %v3335_v36  ;;  %v3446_v41 = vadd.f32 %v3445_v28, %v3411_v22  ;;  %v4314_v63 = vadd.f32 %v3002_v44, %v1790_v46  ;;  %v4278_v56 = vpop.f32.mrb[34].mxu0 }
 0x242   : > { %3087 = vst [vmem:[%s4851_s8 + $0x110] sm:$0xff] %v4313_v33  ;;  %v4315_v58 = vadd.f32 %v4278_v56, %v4126_v60  ;;  %v3005_v13 = vpop.f32.mrb[35].mxu0  ;;  %v3339_v37 = vmul.f32 %v4313_v33, %v3298_v52 }
 0x243   : > { %v3447_v17 = vadd.f32 %v3446_v41, %v3412_v53  ;;  %3085 = vst [vmem:[%s4851_s8 + $0x100] sm:$0xff] %v4314_v63  ;;  %v3337_v16 = vmul.f32 %v4314_v63, %v3288_v27  ;;  %v3371_v30 = vadd.f32 %v3370_v42, %v3336_v47  ;;  %v4316_v55 = vadd.f32 %v3005_v13, %v1793_v20 }
 0x244   : > { %3088 = vst [vmem:[%s4851_s8 + $0x118] sm:$0xff] %v4315_v58 }
 0x245   : > { %v3372_v24 = vadd.f32 %v3371_v30, %v3337_v16  ;;  %v3414_v61 = vmul.f32 %v4314_v63, %v3337_v16  ;;  %v3448_v8 = vadd.f32 %v3447_v17, %v3413_v49  ;;  %3086 = vst [vmem:[%s4851_s8 + $0x108] sm:$0xff] %v4316_v55  ;;  %v3338_v38 = vmul.f32 %v4316_v55, %v3293_v9 }
 0x246   : > { %4679 = shalt.err (!%p4676_p7)
}
 0x247   : > { %s4680_s27 = scalar_lea.hbm %s5976_s28, 4608  ;;  %s4684_s11 = scalar_lea.hbm %s6051_s3, 9216 }
 0x248   : > { %p4681_p8 = scmp.ne.s32.totalorder %s5976_s28, %s4680_s27  ;;  %p4685_p11 = scmp.lt.u32.totalorder %s5976_s28, %s6051_s3 }
 0x249   : > { %p4686_p12 = scmp.lt.u32.totalorder %s4684_s11, %s4680_s27  ;;  %p4688_p0 = scmp.lt.u32.totalorder %s4680_s27, %s5976_s28 }
 0x24a   : > { %p4682_p9 = pnand %p4681_p8, %p4831_p5 }
 0x24b   : > { %p4687_p13 = por %p4686_p12, %p4685_p11 }
 0x24c   : > { %p4683_p10 = pneg %p4682_p9 }
 0x24d   : > { %p4689_p1 = por %p4688_p0, %p4687_p13 }
 0x24f   : > { %p4690_p3 = pnand %p4689_p1, %p4683_p10 }
 0x251   : > { %4693 = shalt.err (!%p4690_p3)
}
 0x252   : > { %s4763_s14 = smov 128   ;;  %s4764_s7 = smov 8   ;;  %v3449_v2 = vadd.f32 %v3448_v8, %v3414_v61  ;;  %v3340_v10 = vmul.f32 %v4315_v58, %v3303_v7  ;;  %v3373_v50 = vadd.f32 %v3372_v24, %v3338_v38  ;;  %v3415_v5 = vmul.f32 %v4316_v55, %v3338_v38  ;;  %v3459_v25 = vld [vmem:[#allocation4] sm:$0x3] }
 0x253   : > { %4582 = dma.vmem_to_hbm [thread:$0]  (%p4831_p5), %s5979_s20, 4608, %s5976_s28, %s5985_s29, %s4763_s14, %s4763_s14, %s4764_s7   ;;  %v3416_v0 = vmul.f32 %v4313_v33, %v3339_v37  ;;  %vm3460_vm8 = vcmask 1040384  }
 0x254   : > { %v3374_v1 = vadd.f32 %v3373_v50, %v3339_v37  ;;  %v3450_v62 = vadd.f32 %v3449_v2, %v3415_v5  ;;  %v3417_v46 = vmul.f32 %v4315_v58, %v3340_v10  ;;  %s4765_s25 = smov [#allocation4]  }
 0x255   : > { %s3492_s20 = sshll.u32 %s4765_s25, 4  ;;  %s3493_s20 = int_to_ptr.vmem [resolvable:$true] %s3492_s20 }
 0x256   : > { %v3375_v59 = vadd.f32 %v3374_v1, %v3340_v10  ;;  %v3451_v29 = vadd.f32 %v3450_v62, %v3416_v0  ;;  %s4694_s22 = scalar_lea.vmem %s3493_s20, 32  ;;  %p4701_p8 = scmp.lt.s32.totalorder %s3493_s20, %s3493_s20 }
 0x257   : > { %p4695_p5 = scmp.ne.s32.totalorder %s3493_s20, %s4694_s22  ;;  %p4702_p9 = scmp.lt.s32.totalorder %s4694_s22, %s4694_s22 }
 0x258   : > { %v3376_v60 = vrot.slane %v3375_v59, 4  ;;  %v3452_v12 = vadd.f32 %v3451_v29, %v3417_v46 }
 0x259   : > { %p4696_p4 = pnand %p4695_p5, %p105_p2  ;;  %p4703_p10 = por %p4702_p9, %p4701_p8 }
 0x25a   : > { %v3453_v34 = vrot.slane %v3452_v12, 4  ;;  %v3377_v18 = vadd.f32 %v3376_v60, %v3375_v59 }
 0x25b   : > { %p4697_p7 = pneg %p4696_p4 }
 0x25c   : > { %v3378_v54 = vrot.slane %v3377_v18, 2  ;;  %v3454_v20 = vadd.f32 %v3453_v34, %v3452_v12 }
 0x25d   : > { %p4704_p11 = pnand %p4703_p10, %p4697_p7 }
 0x25e   : > { %v3379_v45 = vadd.f32 %v3378_v54, %v3377_v18  ;;  %v3455_v14 = vrot.slane %v3454_v20, 2 }
 0x260   : > { %v3380_v35 = vrot.slane %v3379_v45, 1  ;;  %v3456_v51 = vadd.f32 %v3455_v14, %v3454_v20 }
 0x262   : > { %v3457_v4 = vrot.slane %v3456_v51, 1  ;;  %v3381_v43 = vadd.f32 %v3380_v35, %v3379_v45 }
 0x264   : > { %v3458_v3 = vadd.f32 %v3457_v4, %v3456_v51 }
 0x266   : > { %v3461_v23 = vsel %vm3460_vm8, %v3381_v43, %v3458_v3 }
 0x267   : > { %v3462_v19 = vadd.f32 %v3461_v23, %v3459_v25 }
 0x269   : > { %3463 = vst [vmem:[#allocation4] sm:$0x3] %v3462_v19 }
 0x26a   : > { %4707 = shalt.err (!%p4704_p11)
}
 0x26b   : > { %s4708_s29 = scalar_lea.hbm %s6052_s4, 32 }
 0x26c   : > { %p4709_p12 = scmp.ne.s32.totalorder %s6052_s4, %s4708_s29  ;;  %p4714_p1 = scmp.lt.u32.totalorder %s4708_s29, %s6052_s4 }
 0x26e   : > { %p4710_p13 = pnand %p4709_p12, %p105_p2 }
 0x270   : > { %p4711_p0 = pneg %p4710_p13 }
 0x272   : > { %p4716_p3 = pnand %p4714_p1, %p4711_p0 }
 0x274   : > { %4719 = shalt.err (!%p4716_p3)
}
 0x275   : > { %4584 = dma.vmem_to_hbm [thread:$0]  (%p105_p2), %s3493_s20, 32, %s6052_s4, [#allocation5]  }
 0x276   : > { %4737 = dma.done.wait (%p105_p2), [#allocation5], 32  }
 0x277   : > { %4739 = vsyncadd (%p105_p2), [#allocation5], 4294967264 }
 0x278 PF: > { %p4594_p5 = scmp.ge.s32.totalorder %s4758_s18, 2  ;;  %s3508_s10 = sand.u32 1, %s4746_s15  }
 0x279   : > { %s3509_s11 = scalar_lea.sflag [#allocation3], %s3508_s10 }
 0x27a   : > { %p4589_p4 = pnand %p4594_p5, %p4835_p6 }
 0x27c   : > { %4741 = dma.done.wait (!%p4589_p4), %s3509_s11, 4608  }
 0x27d   : > { %4743 = vsyncadd (!%p4589_p4), %s3509_s11, 4294962688  ;;  %p16_p7 = scmp.ge.s32.totalorder %s4816_s21, 4   ;;  %s6117_s15 = smov %s4750_s16 }
 0x27e   : > { %s6118_s16 = smov %s4754_s17  ;;  %s6119_s17 = smov %s4827_s24 }
 0x27f   : > { %s6120_s18 = smov %s4816_s21  ;;  %18 = sbr.rel (!%p16_p7) target bundleno = 4 (0x4), region = 87 }
 0x286   :  { %3514 = vsyncpa [#allocation3], 1 }
 0x287   :  { %3516 = vsyncpa [#allocation3 + $0x1], 1 }
 0x288   :  { %3517 = vsyncpa [#allocation5], 1 }

</bundles_post_ra>
